<compile_context>
chip_gen: v6e
topology: v6e:2x2x1
jax: 0.10.0
libtpu: 0.0.40
codegen_flags: <defaults>
</compile_context>

<pallas_src>
import functools

import jax
import jax.numpy as jnp
from jax.experimental import pallas as pl
from jax.experimental.pallas import tpu as pltpu


def _round_up(n, m):
    return ((n + m - 1) // m) * m


def _cvae_kernel(x_ref, g_ref,
                 w1_ref, b1_ref, w2_ref, b2_ref,
                 w3a_ref, b3a_ref, w3b_ref, b3b_ref,
                 wk_ref,
                 w4_ref, b4_ref, w5_ref, b5_ref, w6_ref, b6_ref,
                 recon_ref, zlogits_ref, zlogvar_ref,
                 *, latent_dim):
    f32 = jnp.float32
    x = x_ref[...]                                   # (TILE, IN_PAD)

    # ---------------- encoder ----------------
    h = jnp.dot(x, w1_ref[...], preferred_element_type=f32) + b1_ref[...]
    h = jnp.maximum(h, 0.0)
    h = jnp.dot(h, w2_ref[...], preferred_element_type=f32) + b2_ref[...]
    h = jnp.maximum(h, 0.0)

    # split (hidden -> 2*latent) projection into two lane-aligned matmuls;
    # this replaces the original enc.chunk(2, dim=-1) in-lane slicing.
    z_logits = jnp.dot(h, w3a_ref[...], preferred_element_type=f32) + b3a_ref[...]
    z_log_var = jnp.dot(h, w3b_ref[...], preferred_element_type=f32) + b3b_ref[...]

    # ---------------- gumbel-softmax (tau=1, hard=False) ----------------
    # Only the first `latent_dim` lanes are real; the rest are zero padding
    # and are masked out of the softmax.
    lane = jax.lax.broadcasted_iota(jnp.int32, z_logits.shape, dimension=1)
    valid = lane < latent_dim
    y = jnp.where(valid, z_logits + g_ref[...], jnp.float32(-1e30))
    y = y - jnp.max(y, axis=-1, keepdims=True)
    ey = jnp.where(valid, jnp.exp(y), 0.0)
    denom = jnp.sum(ey, axis=-1, keepdims=True)
    z = ey * pl.reciprocal(denom, approx=False)      # divide -> EUP reciprocal

    # ---------------- koopman layer (no bias) ----------------
    z_next = jnp.dot(z, wk_ref[...], preferred_element_type=f32)

    # ---------------- decoder ----------------
    d = jnp.dot(z_next, w4_ref[...], preferred_element_type=f32) + b4_ref[...]
    d = jnp.maximum(d, 0.0)
    d = jnp.dot(d, w5_ref[...], preferred_element_type=f32) + b5_ref[...]
    d = jnp.maximum(d, 0.0)
    recon = jnp.dot(d, w6_ref[...], preferred_element_type=f32) + b6_ref[...]

    # Lane-dense (128-wide) unmasked stores.
    recon_ref[...] = recon.astype(recon_ref.dtype)
    zlogits_ref[...] = z_logits.astype(zlogits_ref.dtype)
    zlogvar_ref[...] = z_log_var.astype(zlogvar_ref.dtype)


def _pad2(a, rows, cols):
    r, c = a.shape
    return jnp.pad(a, ((0, rows - r), (0, cols - c)))


def _pad_params(params, in_pad, lat_pad):
    """Zero-pad weights to lane-dense shapes and split w3 into two projections."""
    latent = params["wk"].shape[0]
    hidden = params["w1"].shape[1]
    w3, b3 = params["w3"], params["b3"]
    return dict(
        w1=_pad2(params["w1"], in_pad, hidden), b1=params["b1"],
        w2=params["w2"], b2=params["b2"],
        w3a=_pad2(w3[:, :latent], hidden, lat_pad),
        b3a=_pad2(b3[:, :latent], 1, lat_pad),
        w3b=_pad2(w3[:, latent:], hidden, lat_pad),
        b3b=_pad2(b3[:, latent:], 1, lat_pad),
        wk=_pad2(params["wk"], lat_pad, lat_pad),
        w4=_pad2(params["w4"], lat_pad, hidden), b4=params["b4"],
        w5=params["w5"], b5=params["b5"],
        w6=_pad2(params["w6"], hidden, in_pad), b6=_pad2(params["b6"], 1, in_pad),
    )


def cvae_forward(x, gumbel_noise, params, *, batch_tile=128):
    """Full cVAE forward in one pallas_call with a batch-tile grid."""
    B, input_dim = x.shape
    latent_dim = params["wk"].shape[0]

    in_pad = _round_up(max(input_dim, 128), 128)
    lat_pad = _round_up(max(latent_dim, 128), 128)
    b_pad = _round_up(max(B, batch_tile), batch_tile)
    n_tiles = b_pad // batch_tile

    pp = _pad_params(params, in_pad, lat_pad)

    x_p = jnp.zeros((b_pad, in_pad), jnp.float32).at[:B, :input_dim].set(
        x.astype(jnp.float32))
    g_p = jnp.zeros((b_pad, lat_pad), jnp.float32).at[:B, :latent_dim].set(
        gumbel_noise.astype(jnp.float32))

    # Activations: one (batch_tile, width) block per grid step.
    def tiled(width):
        return pl.BlockSpec((batch_tile, width), lambda i: (i, 0))

    # Weights: constant index_map -> resident in VMEM across all grid steps.
    def resident(shape):
        return pl.BlockSpec(shape, lambda i: (0, 0))

    weight_order = ("w1", "b1", "w2", "b2", "w3a", "b3a", "w3b", "b3b",
                    "wk", "w4", "b4", "w5", "b5", "w6", "b6")
    weight_args = tuple(pp[k] for k in weight_order)
    weight_specs = [resident(pp[k].shape) for k in weight_order]

    kernel = functools.partial(_cvae_kernel, latent_dim=latent_dim)

    out_shape = (
        jax.ShapeDtypeStruct((b_pad, in_pad), jnp.float32),
        jax.ShapeDtypeStruct((b_pad, lat_pad), jnp.float32),
        jax.ShapeDtypeStruct((b_pad, lat_pad), jnp.float32),
    )

    recon_p, zlogits_p, zlogvar_p = pl.pallas_call(
        kernel,
        out_shape=out_shape,
        grid=(n_tiles,),
        in_specs=[tiled(in_pad), tiled(lat_pad)] + weight_specs,
        out_specs=(tiled(in_pad), tiled(lat_pad), tiled(lat_pad)),
        compiler_params=pltpu.CompilerParams(
            # batch tiles are independent -> shard across v7x's 2 TensorCores
            dimension_semantics=("parallel",)),
    )(x_p, g_p, *weight_args)

    return (recon_p[:B, :input_dim],
            zlogits_p[:B, :latent_dim],
            zlogvar_p[:B, :latent_dim])


def _init_linear(key, fan_in, fan_out):
    """Deterministic PyTorch-style init; weight returned as (in, out)."""
    kw, kb = jax.random.split(key)
    bound = 1.0 / jnp.sqrt(jnp.float32(fan_in))
    w = jax.random.uniform(kw, (fan_in, fan_out), jnp.float32, -bound, bound)
    b = jax.random.uniform(kb, (1, fan_out), jnp.float32, -bound, bound)
    return w, b


def init_params(key, input_dim, hidden_dim, latent_dim):
    keys = jax.random.split(key, 7)
    w1, b1 = _init_linear(keys[0], input_dim, hidden_dim)
    w2, b2 = _init_linear(keys[1], hidden_dim, hidden_dim)
    w3, b3 = _init_linear(keys[2], hidden_dim, 2 * latent_dim)
    wk, _ = _init_linear(keys[3], latent_dim, latent_dim)        # no bias
    w4, b4 = _init_linear(keys[4], latent_dim, hidden_dim)
    w5, b5 = _init_linear(keys[5], hidden_dim, hidden_dim)
    w6, b6 = _init_linear(keys[6], hidden_dim, input_dim)
    return dict(w1=w1, b1=b1, w2=w2, b2=b2, w3=w3, b3=b3, wk=wk,
                w4=w4, b4=b4, w5=w5, b5=b5, w6=w6, b6=b6)


def cvae_reference(x, gumbel_noise, params):
    """Pure-JAX reference used for a correctness check (unpadded weights)."""
    relu = lambda v: jnp.maximum(v, 0.0)
    h = relu(x @ params["w1"] + params["b1"])
    h = relu(h @ params["w2"] + params["b2"])
    enc = h @ params["w3"] + params["b3"]
    latent = params["wk"].shape[0]
    z_logits, z_log_var = enc[:, :latent], enc[:, latent:]
    z = jax.nn.softmax(z_logits + gumbel_noise, axis=-1)
    z_next = z @ params["wk"]
    d = relu(z_next @ params["w4"] + params["b4"])
    d = relu(d @ params["w5"] + params["b5"])
    recon = d @ params["w6"] + params["b6"]
    return recon, z_logits, z_log_var


if __name__ == "__main__":
    hidden_dim, latent_dim, input_dim = 32, 16, 3
    batch = 256   # two full 128-row MXU tiles -> grid of 2 batch tiles

    root = jax.random.PRNGKey(0)
    k_params, k_x, k_g = jax.random.split(root, 3)

    params = init_params(k_params, input_dim, hidden_dim, latent_dim)
    x = jax.random.normal(k_x, (batch, input_dim), jnp.float32)
    # Gumbel noise for gumbel_softmax(tau=1, hard=False); sampled outside the
    # kernel, the (logits+noise)/tau softmax itself runs inside the kernel.
    gumbel_noise = jax.random.gumbel(k_g, (batch, latent_dim), jnp.float32)

    recon, z_logits, z_log_var = cvae_forward(x, gumbel_noise, params)
    jax.block_until_ready((recon, z_logits, z_log_var))

    r_ref, zl_ref, zv_ref = cvae_reference(x, gumbel_noise, params)
    assert recon.shape == (batch, input_dim)
    assert z_logits.shape == (batch, latent_dim)
    assert z_log_var.shape == (batch, latent_dim)
    assert jnp.allclose(recon, r_ref, atol=1e-5, rtol=1e-5)
    assert jnp.allclose(z_logits, zl_ref, atol=1e-5, rtol=1e-5)
    assert jnp.allclose(z_log_var, zv_ref, atol=1e-5, rtol=1e-5)

    print("KERNEL_OK")
</pallas_src>

<mosaic_0001>
module attributes {stable_mosaic.version = 11 : i64} {
  func.func @_cvae_kernel(%arg0: i32, %arg1: memref<128x128xf32, #tpu.memory_space<vmem>>, %arg2: memref<128x128xf32, #tpu.memory_space<vmem>>, %arg3: memref<128x32xf32, #tpu.memory_space<vmem>>, %arg4: memref<1x32xf32, #tpu.memory_space<vmem>>, %arg5: memref<32x32xf32, #tpu.memory_space<vmem>>, %arg6: memref<1x32xf32, #tpu.memory_space<vmem>>, %arg7: memref<32x128xf32, #tpu.memory_space<vmem>>, %arg8: memref<1x128xf32, #tpu.memory_space<vmem>>, %arg9: memref<32x128xf32, #tpu.memory_space<vmem>>, %arg10: memref<1x128xf32, #tpu.memory_space<vmem>>, %arg11: memref<128x128xf32, #tpu.memory_space<vmem>>, %arg12: memref<128x32xf32, #tpu.memory_space<vmem>>, %arg13: memref<1x32xf32, #tpu.memory_space<vmem>>, %arg14: memref<32x32xf32, #tpu.memory_space<vmem>>, %arg15: memref<1x32xf32, #tpu.memory_space<vmem>>, %arg16: memref<32x128xf32, #tpu.memory_space<vmem>>, %arg17: memref<1x128xf32, #tpu.memory_space<vmem>>, %arg18: memref<128x128xf32, #tpu.memory_space<vmem>>, %arg19: memref<128x128xf32, #tpu.memory_space<vmem>>, %arg20: memref<128x128xf32, #tpu.memory_space<vmem>>) attributes {dimension_semantics = [#tpu.dimension_semantics<parallel>], iteration_bounds = array<i64: 2>, scalar_prefetch = 0 : i64, scratch_operands = 0 : i64, tpu.core_type = #tpu.core_type<tc>, window_params = [{transform_indices = @transform_0, window_bounds = array<i64: 128, 128>}, {transform_indices = @transform_1, window_bounds = array<i64: 128, 128>}, {pipeline_mode = #tpu.pipeline_mode<synchronous>, transform_indices = @transform_2, window_bounds = array<i64: 128, 32>}, {pipeline_mode = #tpu.pipeline_mode<synchronous>, transform_indices = @transform_3, window_bounds = array<i64: 1, 32>}, {pipeline_mode = #tpu.pipeline_mode<synchronous>, transform_indices = @transform_4, window_bounds = array<i64: 32, 32>}, {pipeline_mode = #tpu.pipeline_mode<synchronous>, transform_indices = @transform_5, window_bounds = array<i64: 1, 32>}, {pipeline_mode = #tpu.pipeline_mode<synchronous>, transform_indices = @transform_6, window_bounds = array<i64: 32, 128>}, {pipeline_mode = #tpu.pipeline_mode<synchronous>, transform_indices = @transform_7, window_bounds = array<i64: 1, 128>}, {pipeline_mode = #tpu.pipeline_mode<synchronous>, transform_indices = @transform_8, window_bounds = array<i64: 32, 128>}, {pipeline_mode = #tpu.pipeline_mode<synchronous>, transform_indices = @transform_9, window_bounds = array<i64: 1, 128>}, {pipeline_mode = #tpu.pipeline_mode<synchronous>, transform_indices = @transform_10, window_bounds = array<i64: 128, 128>}, {pipeline_mode = #tpu.pipeline_mode<synchronous>, transform_indices = @transform_11, window_bounds = array<i64: 128, 32>}, {pipeline_mode = #tpu.pipeline_mode<synchronous>, transform_indices = @transform_12, window_bounds = array<i64: 1, 32>}, {pipeline_mode = #tpu.pipeline_mode<synchronous>, transform_indices = @transform_13, window_bounds = array<i64: 32, 32>}, {pipeline_mode = #tpu.pipeline_mode<synchronous>, transform_indices = @transform_14, window_bounds = array<i64: 1, 32>}, {pipeline_mode = #tpu.pipeline_mode<synchronous>, transform_indices = @transform_15, window_bounds = array<i64: 32, 128>}, {pipeline_mode = #tpu.pipeline_mode<synchronous>, transform_indices = @transform_16, window_bounds = array<i64: 1, 128>}, {transform_indices = @transform_17, window_bounds = array<i64: 128, 128>}, {transform_indices = @transform_18, window_bounds = array<i64: 128, 128>}, {transform_indices = @transform_19, window_bounds = array<i64: 128, 128>}]} {
    %c0 = arith.constant 0 : index
    %c0_0 = arith.constant 0 : index
    %0 = vector.load %arg1[%c0, %c0_0] : memref<128x128xf32, #tpu.memory_space<vmem>>, vector<128x128xf32>
    %c0_1 = arith.constant 0 : index
    %c0_2 = arith.constant 0 : index
    %1 = vector.load %arg3[%c0_1, %c0_2] : memref<128x32xf32, #tpu.memory_space<vmem>>, vector<128x32xf32>
    %cst = arith.constant dense<0.000000e+00> : vector<128x32xf32>
    %2 = tpu.matmul %0, %1, %cst {dimension_numbers = #tpu.dot_dimension_numbers<[1], [0], [0], [1], [0, 0, 1, 1], [], []>} : vector<128x128xf32>, vector<128x32xf32>, vector<128x32xf32> -> vector<128x32xf32>
    %c0_3 = arith.constant 0 : index
    %c0_4 = arith.constant 0 : index
    %3 = vector.load %arg4[%c0_3, %c0_4] : memref<1x32xf32, #tpu.memory_space<vmem>>, vector<1x32xf32>
    %4 = vector.broadcast %3 : vector<1x32xf32> to vector<128x32xf32>
    %5 = arith.addf %2, %4 : vector<128x32xf32>
    %cst_5 = arith.constant 0.000000e+00 : f32
    %6 = vector.broadcast %cst_5 : f32 to vector<128x32xf32>
    %7 = arith.maximumf %5, %6 : vector<128x32xf32>
    %c0_6 = arith.constant 0 : index
    %c0_7 = arith.constant 0 : index
    %8 = vector.load %arg5[%c0_6, %c0_7] : memref<32x32xf32, #tpu.memory_space<vmem>>, vector<32x32xf32>
    %cst_8 = arith.constant dense<0.000000e+00> : vector<128x32xf32>
    %9 = tpu.matmul %7, %8, %cst_8 {dimension_numbers = #tpu.dot_dimension_numbers<[1], [0], [0], [1], [0, 0, 1, 1], [], []>} : vector<128x32xf32>, vector<32x32xf32>, vector<128x32xf32> -> vector<128x32xf32>
    %c0_9 = arith.constant 0 : index
    %c0_10 = arith.constant 0 : index
    %10 = vector.load %arg6[%c0_9, %c0_10] : memref<1x32xf32, #tpu.memory_space<vmem>>, vector<1x32xf32>
    %11 = vector.broadcast %10 : vector<1x32xf32> to vector<128x32xf32>
    %12 = arith.addf %9, %11 : vector<128x32xf32>
    %cst_11 = arith.constant 0.000000e+00 : f32
    %13 = vector.broadcast %cst_11 : f32 to vector<128x32xf32>
    %14 = arith.maximumf %12, %13 : vector<128x32xf32>
    %c0_12 = arith.constant 0 : index
    %c0_13 = arith.constant 0 : index
    %15 = vector.load %arg7[%c0_12, %c0_13] : memref<32x128xf32, #tpu.memory_space<vmem>>, vector<32x128xf32>
    %cst_14 = arith.constant dense<0.000000e+00> : vector<128x128xf32>
    %16 = tpu.matmul %14, %15, %cst_14 {dimension_numbers = #tpu.dot_dimension_numbers<[1], [0], [0], [1], [0, 0, 1, 1], [], []>} : vector<128x32xf32>, vector<32x128xf32>, vector<128x128xf32> -> vector<128x128xf32>
    %c0_15 = arith.constant 0 : index
    %c0_16 = arith.constant 0 : index
    %17 = vector.load %arg8[%c0_15, %c0_16] : memref<1x128xf32, #tpu.memory_space<vmem>>, vector<1x128xf32>
    %18 = vector.broadcast %17 : vector<1x128xf32> to vector<128x128xf32>
    %19 = arith.addf %16, %18 : vector<128x128xf32>
    %c0_17 = arith.constant 0 : index
    %c0_18 = arith.constant 0 : index
    %20 = vector.load %arg9[%c0_17, %c0_18] : memref<32x128xf32, #tpu.memory_space<vmem>>, vector<32x128xf32>
    %cst_19 = arith.constant dense<0.000000e+00> : vector<128x128xf32>
    %21 = tpu.matmul %14, %20, %cst_19 {dimension_numbers = #tpu.dot_dimension_numbers<[1], [0], [0], [1], [0, 0, 1, 1], [], []>} : vector<128x32xf32>, vector<32x128xf32>, vector<128x128xf32> -> vector<128x128xf32>
    %c0_20 = arith.constant 0 : index
    %c0_21 = arith.constant 0 : index
    %22 = vector.load %arg10[%c0_20, %c0_21] : memref<1x128xf32, #tpu.memory_space<vmem>>, vector<1x128xf32>
    %23 = vector.broadcast %22 : vector<1x128xf32> to vector<128x128xf32>
    %24 = arith.addf %21, %23 : vector<128x128xf32>
    %25 = tpu.iota {dimensions = array<i32: 1>} : vector<128x128xi32>
    %c16_i32 = arith.constant 16 : i32
    %26 = vector.broadcast %c16_i32 : i32 to vector<128x128xi32>
    %27 = arith.cmpi slt, %25, %26 : vector<128x128xi32>
    %c0_22 = arith.constant 0 : index
    %c0_23 = arith.constant 0 : index
    %28 = vector.load %arg2[%c0_22, %c0_23] : memref<128x128xf32, #tpu.memory_space<vmem>>, vector<128x128xf32>
    %29 = arith.addf %19, %28 : vector<128x128xf32>
    %cst_24 = arith.constant -1.000000e+30 : f32
    %30 = vector.broadcast %cst_24 : f32 to vector<128x128xf32>
    %31 = arith.select %27, %29, %30 : vector<128x128xi1>, vector<128x128xf32>
    %cst_25 = arith.constant dense<0xFF800000> : vector<128xf32>
    %32 = vector.multi_reduction <maximumf>, %31, %cst_25 [1] : vector<128x128xf32> to vector<128xf32>
    %33 = vector.shape_cast %32 : vector<128xf32> to vector<128x1xf32>
    %34 = vector.broadcast %33 : vector<128x1xf32> to vector<128x128xf32>
    %35 = arith.subf %31, %34 : vector<128x128xf32>
    %36 = math.exp %35 : vector<128x128xf32>
    %cst_26 = arith.constant 0.000000e+00 : f32
    %37 = vector.broadcast %cst_26 : f32 to vector<128x128xf32>
    %38 = arith.select %27, %36, %37 : vector<128x128xi1>, vector<128x128xf32>
    %cst_27 = arith.constant dense<0.000000e+00> : vector<128xf32>
    %39 = vector.multi_reduction <add>, %38, %cst_27 [1] : vector<128x128xf32> to vector<128xf32>
    %40 = vector.shape_cast %39 : vector<128xf32> to vector<128x1xf32>
    %41 = tpu.reciprocal %40 : vector<128x1xf32> -> vector<128x1xf32>
    %42 = vector.broadcast %41 : vector<128x1xf32> to vector<128x128xf32>
    %43 = arith.mulf %38, %42 : vector<128x128xf32>
    %c0_28 = arith.constant 0 : index
    %c0_29 = arith.constant 0 : index
    %44 = vector.load %arg11[%c0_28, %c0_29] : memref<128x128xf32, #tpu.memory_space<vmem>>, vector<128x128xf32>
    %cst_30 = arith.constant dense<0.000000e+00> : vector<128x128xf32>
    %45 = tpu.matmul %43, %44, %cst_30 {dimension_numbers = #tpu.dot_dimension_numbers<[1], [0], [0], [1], [0, 0, 1, 1], [], []>} : vector<128x128xf32>, vector<128x128xf32>, vector<128x128xf32> -> vector<128x128xf32>
    %c0_31 = arith.constant 0 : index
    %c0_32 = arith.constant 0 : index
    %46 = vector.load %arg12[%c0_31, %c0_32] : memref<128x32xf32, #tpu.memory_space<vmem>>, vector<128x32xf32>
    %cst_33 = arith.constant dense<0.000000e+00> : vector<128x32xf32>
    %47 = tpu.matmul %45, %46, %cst_33 {dimension_numbers = #tpu.dot_dimension_numbers<[1], [0], [0], [1], [0, 0, 1, 1], [], []>} : vector<128x128xf32>, vector<128x32xf32>, vector<128x32xf32> -> vector<128x32xf32>
    %c0_34 = arith.constant 0 : index
    %c0_35 = arith.constant 0 : index
    %48 = vector.load %arg13[%c0_34, %c0_35] : memref<1x32xf32, #tpu.memory_space<vmem>>, vector<1x32xf32>
    %49 = vector.broadcast %48 : vector<1x32xf32> to vector<128x32xf32>
    %50 = arith.addf %47, %49 : vector<128x32xf32>
    %cst_36 = arith.constant 0.000000e+00 : f32
    %51 = vector.broadcast %cst_36 : f32 to vector<128x32xf32>
    %52 = arith.maximumf %50, %51 : vector<128x32xf32>
    %c0_37 = arith.constant 0 : index
    %c0_38 = arith.constant 0 : index
    %53 = vector.load %arg14[%c0_37, %c0_38] : memref<32x32xf32, #tpu.memory_space<vmem>>, vector<32x32xf32>
    %cst_39 = arith.constant dense<0.000000e+00> : vector<128x32xf32>
    %54 = tpu.matmul %52, %53, %cst_39 {dimension_numbers = #tpu.dot_dimension_numbers<[1], [0], [0], [1], [0, 0, 1, 1], [], []>} : vector<128x32xf32>, vector<32x32xf32>, vector<128x32xf32> -> vector<128x32xf32>
    %c0_40 = arith.constant 0 : index
    %c0_41 = arith.constant 0 : index
    %55 = vector.load %arg15[%c0_40, %c0_41] : memref<1x32xf32, #tpu.memory_space<vmem>>, vector<1x32xf32>
    %56 = vector.broadcast %55 : vector<1x32xf32> to vector<128x32xf32>
    %57 = arith.addf %54, %56 : vector<128x32xf32>
    %cst_42 = arith.constant 0.000000e+00 : f32
    %58 = vector.broadcast %cst_42 : f32 to vector<128x32xf32>
    %59 = arith.maximumf %57, %58 : vector<128x32xf32>
    %c0_43 = arith.constant 0 : index
    %c0_44 = arith.constant 0 : index
    %60 = vector.load %arg16[%c0_43, %c0_44] : memref<32x128xf32, #tpu.memory_space<vmem>>, vector<32x128xf32>
    %cst_45 = arith.constant dense<0.000000e+00> : vector<128x128xf32>
    %61 = tpu.matmul %59, %60, %cst_45 {dimension_numbers = #tpu.dot_dimension_numbers<[1], [0], [0], [1], [0, 0, 1, 1], [], []>} : vector<128x32xf32>, vector<32x128xf32>, vector<128x128xf32> -> vector<128x128xf32>
    %c0_46 = arith.constant 0 : index
    %c0_47 = arith.constant 0 : index
    %62 = vector.load %arg17[%c0_46, %c0_47] : memref<1x128xf32, #tpu.memory_space<vmem>>, vector<1x128xf32>
    %63 = vector.broadcast %62 : vector<1x128xf32> to vector<128x128xf32>
    %64 = arith.addf %61, %63 : vector<128x128xf32>
    %c0_48 = arith.constant 0 : index
    %c0_49 = arith.constant 0 : index
    %65 = vector.load %arg18[%c0_48, %c0_49] : memref<128x128xf32, #tpu.memory_space<vmem>>, vector<128x128xf32>
    tpu.vector_store %arg18[%c0_48, %c0_49], %64 {strides = array<i32>} : memref<128x128xf32, #tpu.memory_space<vmem>>, vector<128x128xf32>,
    %c0_50 = arith.constant 0 : index
    %c0_51 = arith.constant 0 : index
    %66 = vector.load %arg19[%c0_50, %c0_51] : memref<128x128xf32, #tpu.memory_space<vmem>>, vector<128x128xf32>
    tpu.vector_store %arg19[%c0_50, %c0_51], %19 {strides = array<i32>} : memref<128x128xf32, #tpu.memory_space<vmem>>, vector<128x128xf32>,
    %c0_52 = arith.constant 0 : index
    %c0_53 = arith.constant 0 : index
    %67 = vector.load %arg20[%c0_52, %c0_53] : memref<128x128xf32, #tpu.memory_space<vmem>>, vector<128x128xf32>
    tpu.vector_store %arg20[%c0_52, %c0_53], %24 {strides = array<i32>} : memref<128x128xf32, #tpu.memory_space<vmem>>, vector<128x128xf32>,
    return
  }
  func.func @transform_0(%arg0: i32) -> (i32, i32) {
    %c0_i32 = arith.constant 0 : i32
    %c0_i32_0 = arith.constant 0 : i32
    return %arg0, %c0_i32 : i32, i32
  }
  func.func @transform_1(%arg0: i32) -> (i32, i32) {
    %c0_i32 = arith.constant 0 : i32
    %c0_i32_0 = arith.constant 0 : i32
    return %arg0, %c0_i32 : i32, i32
  }
  func.func @transform_2(%arg0: i32) -> (i32, i32) {
    %c0_i32 = arith.constant 0 : i32
    %c0_i32_0 = arith.constant 0 : i32
    %c0_i32_1 = arith.constant 0 : i32
    return %c0_i32, %c0_i32_0 : i32, i32
  }
  func.func @transform_3(%arg0: i32) -> (i32, i32) {
    %c0_i32 = arith.constant 0 : i32
    %c0_i32_0 = arith.constant 0 : i32
    %c0_i32_1 = arith.constant 0 : i32
    return %c0_i32, %c0_i32_0 : i32, i32
  }
  func.func @transform_4(%arg0: i32) -> (i32, i32) {
    %c0_i32 = arith.constant 0 : i32
    %c0_i32_0 = arith.constant 0 : i32
    %c0_i32_1 = arith.constant 0 : i32
    return %c0_i32, %c0_i32_0 : i32, i32
  }
  func.func @transform_5(%arg0: i32) -> (i32, i32) {
    %c0_i32 = arith.constant 0 : i32
    %c0_i32_0 = arith.constant 0 : i32
    %c0_i32_1 = arith.constant 0 : i32
    return %c0_i32, %c0_i32_0 : i32, i32
  }
  func.func @transform_6(%arg0: i32) -> (i32, i32) {
    %c0_i32 = arith.constant 0 : i32
    %c0_i32_0 = arith.constant 0 : i32
    %c0_i32_1 = arith.constant 0 : i32
    return %c0_i32, %c0_i32_0 : i32, i32
  }
  func.func @transform_7(%arg0: i32) -> (i32, i32) {
    %c0_i32 = arith.constant 0 : i32
    %c0_i32_0 = arith.constant 0 : i32
    %c0_i32_1 = arith.constant 0 : i32
    return %c0_i32, %c0_i32_0 : i32, i32
  }
  func.func @transform_8(%arg0: i32) -> (i32, i32) {
    %c0_i32 = arith.constant 0 : i32
    %c0_i32_0 = arith.constant 0 : i32
    %c0_i32_1 = arith.constant 0 : i32
    return %c0_i32, %c0_i32_0 : i32, i32
  }
  func.func @transform_9(%arg0: i32) -> (i32, i32) {
    %c0_i32 = arith.constant 0 : i32
    %c0_i32_0 = arith.constant 0 : i32
    %c0_i32_1 = arith.constant 0 : i32
    return %c0_i32, %c0_i32_0 : i32, i32
  }
  func.func @transform_10(%arg0: i32) -> (i32, i32) {
    %c0_i32 = arith.constant 0 : i32
    %c0_i32_0 = arith.constant 0 : i32
    %c0_i32_1 = arith.constant 0 : i32
    return %c0_i32, %c0_i32_0 : i32, i32
  }
  func.func @transform_11(%arg0: i32) -> (i32, i32) {
    %c0_i32 = arith.constant 0 : i32
    %c0_i32_0 = arith.constant 0 : i32
    %c0_i32_1 = arith.constant 0 : i32
    return %c0_i32, %c0_i32_0 : i32, i32
  }
  func.func @transform_12(%arg0: i32) -> (i32, i32) {
    %c0_i32 = arith.constant 0 : i32
    %c0_i32_0 = arith.constant 0 : i32
    %c0_i32_1 = arith.constant 0 : i32
    return %c0_i32, %c0_i32_0 : i32, i32
  }
  func.func @transform_13(%arg0: i32) -> (i32, i32) {
    %c0_i32 = arith.constant 0 : i32
    %c0_i32_0 = arith.constant 0 : i32
    %c0_i32_1 = arith.constant 0 : i32
    return %c0_i32, %c0_i32_0 : i32, i32
  }
  func.func @transform_14(%arg0: i32) -> (i32, i32) {
    %c0_i32 = arith.constant 0 : i32
    %c0_i32_0 = arith.constant 0 : i32
    %c0_i32_1 = arith.constant 0 : i32
    return %c0_i32, %c0_i32_0 : i32, i32
  }
  func.func @transform_15(%arg0: i32) -> (i32, i32) {
    %c0_i32 = arith.constant 0 : i32
    %c0_i32_0 = arith.constant 0 : i32
    %c0_i32_1 = arith.constant 0 : i32
    return %c0_i32, %c0_i32_0 : i32, i32
  }
  func.func @transform_16(%arg0: i32) -> (i32, i32) {
    %c0_i32 = arith.constant 0 : i32
    %c0_i32_0 = arith.constant 0 : i32
    %c0_i32_1 = arith.constant 0 : i32
    return %c0_i32, %c0_i32_0 : i32, i32
  }
  func.func @transform_17(%arg0: i32) -> (i32, i32) {
    %c0_i32 = arith.constant 0 : i32
    %c0_i32_0 = arith.constant 0 : i32
    return %arg0, %c0_i32 : i32, i32
  }
  func.func @transform_18(%arg0: i32) -> (i32, i32) {
    %c0_i32 = arith.constant 0 : i32
    %c0_i32_0 = arith.constant 0 : i32
    return %arg0, %c0_i32 : i32, i32
  }
  func.func @transform_19(%arg0: i32) -> (i32, i32) {
    %c0_i32 = arith.constant 0 : i32
    %c0_i32_0 = arith.constant 0 : i32
    return %arg0, %c0_i32 : i32, i32
  }
}

</mosaic_0001>

<bundles_post_ra>
// kernel: tpu_custom_call.1
= control target key start
LH: loop header
LB: loop body
LE: loop exit
PB: predicated region body
PF: predicated region fallthrough
CT: control target
= control target key end

     0   :  { %s5045_s0 = inlined_call_operand.vmem [shape: f32[256,128], index: 0, kind: input, shape index: {}]   ;;  %s5046_s1 = inlined_call_operand.hbm [shape: f32[256,128], index: 1, kind: input, shape index: {}]   ;;  %s5047_s2 = inlined_call_operand.vmem [shape: f32[128,32], index: 2, kind: input, shape index: {}]   ;;  %s5048_s3 = inlined_call_operand.vmem [shape: f32[1,32], index: 3, kind: input, shape index: {}]   ;;  %s5049_s4 = inlined_call_operand.vmem [shape: f32[32,32], index: 4, kind: input, shape index: {}]   ;;  %s5050_s5 = inlined_call_operand.vmem [shape: f32[1,32], index: 5, kind: input, shape index: {}]   ;;  %s5051_s6 = inlined_call_operand.hbm [shape: f32[32,128], index: 6, kind: input, shape index: {}]   ;;  %s5052_s7 = inlined_call_operand.vmem [shape: f32[1,128], index: 7, kind: input, shape index: {}]   ;;  %s5053_s8 = inlined_call_operand.hbm [shape: f32[32,128], index: 8, kind: input, shape index: {}]   ;;  %s5054_s9 = inlined_call_operand.vmem [shape: f32[1,128], index: 9, kind: input, shape index: {}]   ;;  %s5055_s10 = inlined_call_operand.hbm [shape: f32[128,128], index: 10, kind: input, shape index: {}]   ;;  %s5056_s11 = inlined_call_operand.vmem [shape: f32[128,32], index: 11, kind: input, shape index: {}]   ;;  %s5057_s12 = inlined_call_operand.vmem [shape: f32[1,32], index: 12, kind: input, shape index: {}]   ;;  %s5058_s13 = inlined_call_operand.hbm [shape: f32[32,32], index: 13, kind: input, shape index: {}]   ;;  %s5059_s14 = inlined_call_operand.vmem [shape: f32[1,32], index: 14, kind: input, shape index: {}]   ;;  %s5060_s15 = inlined_call_operand.hbm [shape: f32[32,128], index: 15, kind: input, shape index: {}]   ;;  %s5061_s16 = inlined_call_operand.vmem [shape: f32[1,128], index: 16, kind: input, shape index: {}]   ;;  %s5062_s17 = inlined_call_operand.hbm [shape: f32[256,128], index: 17, kind: output, shape index: {0}]   ;;  %s5063_s18 = inlined_call_operand.hbm [shape: f32[256,128], index: 18, kind: output, shape index: {1}]   ;;  %s5064_s19 = inlined_call_operand.hbm [shape: f32[256,128], index: 19, kind: output, shape index: {2}]  }
   0x1   :  { %5079 = sst [smem:[#allocation26_spill]] %s5045_s0 }
   0x2   :  { %5080 = sst [smem:[#allocation27_spill]] %s5046_s1 }
   0x3   :  { %5081 = sst [smem:[#allocation28_spill]] %s5047_s2 }
   0x4   :  { %5082 = sst [smem:[#allocation29_spill]] %s5048_s3 }
   0x5   :  { %5083 = sst [smem:[#allocation30_spill]] %s5049_s4 }
   0x6   :  { %5084 = sst [smem:[#allocation31_spill]] %s5051_s6 }
   0x7   :  { %5085 = sst [smem:[#allocation32_spill]] %s5053_s8 }
   0x8   :  { %5086 = sst [smem:[#allocation33_spill]] %s5055_s10 }
   0x9   :  { %5087 = sst [smem:[#allocation34_spill]] %s5058_s13 }
   0xa   :  { %5088 = sst [smem:[#allocation35_spill]] %s5060_s15 }
   0xb   :  { %5089 = sst [smem:[#allocation36_spill]] %s5061_s16 }
   0xc   :  { %5090 = sst [smem:[#allocation37_spill]] %s5062_s17 }
   0xd   :  { %25 = vsyncpa [#allocation3], 0 }
   0xe   :  { %27 = vsyncpa [#allocation3 + $0x1], 0 }
   0xf   :  { %28 = vsyncpa [#allocation6], 0 }
  0x10   :  { %29 = vsyncpa [#allocation9], 0 }
  0x11   :  { %30 = vsyncpa [#allocation12], 0 }
  0x12   :  { %31 = vsyncpa [#allocation4], 0 }
  0x13   :  { %33 = vsyncpa [#allocation4 + $0x1], 0 }
  0x14   :  { %34 = vsyncpa [#allocation15], 0 }
  0x15   :  { %36 = vsyncpa [#allocation15 + $0x1], 0  ;;  %s4058_s0 = smov 0   ;;  %s4060_s30 = smov 0  }
  0x16   :  { %s4062_s20 = smov 0   ;;  %s4064_s21 = smov 0  }
  0x17 LB: > { %5091 = sst [smem:[#allocation23_spill]] %s3939_s20  ;;  %s3945_s1 = smov [#allocation5]   ;;  %s3943_s21 = sphi %s4064_s21, %s5127_s21   ;;  %s3939_s20 = sphi %s4062_s20, %s5129_s20   ;;  %s3935_s30 = sphi %s4060_s30, %s5131_s30   ;;  %s3931_s0 = sphi %s4058_s0, %s5130_s0  }
  0x18   : > { %s516_s22 = sshll.u32 %s3945_s1, 4  ;;  %s4079_s2 = sadd.s32 4294967295, %s3943_s21   ;;  %s517_s22 = int_to_ptr.vmem [resolvable:$true] %s516_s22 }
  0x19   : > { %p2798_p0 = scmp.ge.s32.totalorder %s3943_s21, 1  ;;  %p5071_p1 = scmp.eq.s32.totalorder %s4079_s2, 0 }
  0x1a   : > { %p492_p2 = scmp.lt.s32.totalorder %s3943_s21, 3  ;;  %s3946_s24 = smov [#allocation8]  }
  0x1b   : > { %s548_s25 = sshll.u32 %s3946_s24, 4  ;;  %s3947_s26 = smov [#allocation7]   ;;  %s4097_s25 = int_to_ptr.vmem [resolvable:$true] %s548_s25 }
  0x1c   : > { %p4084_p3 = pnand %p2798_p0, %p492_p2  ;;  %s532_s27 = sshll.u32 %s3947_s26, 4  ;;  %s4099_s27 = int_to_ptr.vmem [resolvable:$true] %s532_s27 }
  0x1d   : > { %s3664_s29 = scalar_lea.vmem %s517_s22, 512  ;;  %p3672_p11 = scmp.lt.s32.totalorder %s517_s22, %s517_s22 }
  0x1e   : > { %s5092_s23 = scalar_select %p4084_p3, 1, 0 }
  0x1f   : > { %p3506_p5 = pneg %p4084_p3  ;;  %p3665_p8 = scmp.ne.s32.totalorder %s517_s22, %s3664_s29 }
  0x20   : > { %p3673_p12 = scmp.lt.s32.totalorder %s3664_s29, %s3664_s29 }
  0x21   : > { %p4093_p6 = pnand %p3506_p5, %p5071_p1 }
  0x22   : > { %p3674_p13 = por %p3673_p12, %p3672_p11 }
  0x23   : > { %p4103_p7 = pneg %p4093_p6 }
  0x25   : > { %p3667_p9 = pnand %p3665_p8, %p4103_p7 }
  0x27   : > { %p3668_p10 = pneg %p3667_p9 }
  0x29   : > { %p3675_p0 = pnand %p3674_p13, %p3668_p10 }
  0x2b   : > { %3678 = shalt.err (!%p3675_p0)
}
  0x2c   : > { %s5068_s1 = smov 128   ;;  %s5069_s24 = smov 8  }
  0x2d   : > { %s5095_s6 = sld [smem:[#allocation31_spill]]  ;;  %s3690_s16 = scalar_lea.vmem %s4097_s25, 2048 }
  0x2e   : > { %p3691_p2 = scmp.ne.s32.totalorder %s4097_s25, %s3690_s16  ;;  %p3698_p9 = scmp.lt.s32.totalorder %s4097_s25, %s4097_s25 }
  0x2f   : > { %p3699_p10 = scmp.lt.s32.totalorder %s3690_s16, %s3690_s16 }
  0x30   : > { %p3693_p5 = pnand %p3691_p2, %p4103_p7 }
  0x31   : > { %p3700_p11 = por %p3699_p10, %p3698_p9 }
  0x32   : > { %p3694_p8 = pneg %p3693_p5 }
  0x33   : > { %3509 = dma.hbm_to_vmem [thread:$0]  (!%p4093_p6), %s5095_s6, 512, %s517_s22, [#allocation6], %s5068_s1, %s5068_s1, %s5069_s24  }
  0x34   : > { %p3701_p12 = pnand %p3700_p11, %p3694_p8 }
  0x36   : > { %3704 = shalt.err (!%p3701_p12)
}
  0x37   : > { %s5096_s10 = sld [smem:[#allocation33_spill]]  ;;  %s3716_s22 = scalar_lea.vmem %s4099_s27, 512 }
  0x38   : > { %p3717_p13 = scmp.ne.s32.totalorder %s4099_s27, %s3716_s22  ;;  %p3724_p5 = scmp.lt.s32.totalorder %s4099_s27, %s4099_s27 }
  0x39   : > { %p3725_p8 = scmp.lt.s32.totalorder %s3716_s22, %s3716_s22 }
  0x3a   : > { %p3719_p0 = pnand %p3717_p13, %p4103_p7 }
  0x3b   : > { %p3726_p9 = por %p3725_p8, %p3724_p5 }
  0x3c   : > { %p3720_p2 = pneg %p3719_p0 }
  0x3d   : > { %3515 = dma.hbm_to_vmem [thread:$0]  (!%p4093_p6), %s5096_s10, 2048, %s4097_s25, [#allocation9], %s5068_s1, %s5068_s1, %s5069_s24  }
  0x3e   : > { %p3727_p10 = pnand %p3726_p9, %p3720_p2 }
  0x40   : > { %3730 = shalt.err (!%p3727_p10)
}
  0x41   : > { %s5097_s8 = sld [smem:[#allocation32_spill]]  ;;  %s3950_s25 = smov [#allocation10]  }
  0x42   : > { %s567_s29 = sshll.u32 %s3950_s25, 4  ;;  %s3951_s17 = smov [#allocation11]   ;;  %s568_s29 = int_to_ptr.vmem [resolvable:$true] %s567_s29 }
  0x43   : > { %s583_s6 = sshll.u32 %s3951_s17, 4  ;;  %s3742_s22 = scalar_lea.vmem %s568_s29, 512  ;;  %s584_s6 = int_to_ptr.vmem [resolvable:$true] %s583_s6 }
  0x44   : > { %p3743_p11 = scmp.ne.s32.totalorder %s568_s29, %s3742_s22  ;;  %p3750_p0 = scmp.lt.s32.totalorder %s568_s29, %s568_s29 }
  0x45   : > { %p3751_p2 = scmp.lt.s32.totalorder %s3742_s22, %s3742_s22 }
  0x46   : > { %p3745_p12 = pnand %p3743_p11, %p4103_p7 }
  0x47   : > { %3512 = dma.hbm_to_vmem [thread:$0]  (!%p4093_p6), %s5097_s8, 512, %s4099_s27, [#allocation6], %s5068_s1, %s5068_s1, %s5069_s24  }
  0x48   : > { %p3746_p13 = pneg %p3745_p12  ;;  %p3752_p5 = por %p3751_p2, %p3750_p0 }
  0x4a   : > { %p3753_p8 = pnand %p3752_p5, %p3746_p13 }
  0x4c   : > { %3756 = shalt.err (!%p3753_p8)
}
  0x4d   : > { %s5098_s13 = sld [smem:[#allocation34_spill]]  ;;  %s3768_s26 = scalar_lea.vmem %s584_s6, 512 }
  0x4e   : > { %p3769_p9 = scmp.ne.s32.totalorder %s584_s6, %s3768_s26  ;;  %p3776_p12 = scmp.lt.s32.totalorder %s584_s6, %s584_s6 }
  0x4f   : > { %p3777_p0 = scmp.lt.s32.totalorder %s3768_s26, %s3768_s26 }
  0x50   : > { %p3771_p10 = pnand %p3769_p9, %p4103_p7 }
  0x51   : > { %p3778_p13 = por %p3777_p0, %p3776_p12 }
  0x52   : > { %p3772_p11 = pneg %p3771_p10 }
  0x53   : > { %3518 = dma.hbm_to_vmem [thread:$0]  (!%p4093_p6), %s5098_s13, 512, %s568_s29, [#allocation9], %s5068_s1, %s5068_s1, %s5069_s24  }
  0x54   : > { %p3779_p2 = pnand %p3778_p13, %p3772_p11 }
  0x56   : > { %3782 = shalt.err (!%p3779_p2)
}
  0x57   : > { %s5099_s15 = sld [smem:[#allocation35_spill]]  ;;  %s5070_s3 = sadd.s32 4294967294, %s3943_s21  }
  0x58   : > { %s4169_s28 = sadd.s32 1, %s3943_s21   ;;  %s75_s29 = sadd.s32 1, %s3939_s20 }
  0x59   : > { %5100 = sst [smem:[#allocation24_spill]] %s4169_s28  ;;  %s72_s22 = ssub.s32 %s3943_s21, %s4169_s28 }
  0x5a   : > { %p82_p7 = scmp.ne.s32.totalorder %s3939_s20, %s3935_s30  ;;  %p73_p5 = scmp.eq.s32.totalorder %s72_s22, 0 }
  0x5b   : > { %p83_p8 = scmp.eq.s32.totalorder %s3943_s21, 0  ;;  %p88_p9 = scmp.ne.s32.totalorder %s3935_s30, %s3931_s0 }
  0x5c   : > { %p427_p10 = scmp.eq.s32.totalorder %s4079_s2, 1  ;;  %p433_p0 = scmp.eq.s32.totalorder %s5070_s3, 1 }
  0x5d   : > { %3521 = dma.hbm_to_vmem [thread:$0]  (!%p4093_p6), %s5099_s15, 512, %s584_s6, [#allocation12], %s5068_s1, %s5068_s1, %s5069_s24  }
  0x5e   : > { %s4181_s27 = scalar_select %p73_p5, %s3939_s20, %s75_s29  }
  0x5f   : > { %p84_p11 = por %p83_p8, %p82_p7  ;;  %p4185_p12 = por %p5071_p1, %p88_p9 }
  0x60   : > { %5101 = sst [smem:[#allocation25_spill]] %s4181_s27  ;;  %p4189_p6 = por %p427_p10, %p82_p7 }
  0x61   : > { %s5102_s16 = scalar_select %p4185_p12, 1, 0 }
  0x62   : > { %s5103_s6 = scalar_select %p4189_p6, 1, 0 }
  0x63   : > { %p3541_p13 = scmp.lt.s32.totalorder %s3943_s21, 2  ;;  %s609_s26 = sand.u32 1, %s3939_s20  }
  0x64   : > { %p4197_p2 = por %p433_p0, %p88_p9  ;;  %s2805_s17 = sshll.u32 %s609_s26, 7 }
  0x65   : > { %s2918_s29 = sshll.u32 %s3943_s21, 11  ;;  %s5105_s24 = sld [smem:[#allocation27_spill]] }
  0x66   : > { %s5104_s25 = scalar_select %p4197_p2, 1, 0 }
  0x67   : > { %s613_s10 = scalar_lea.vmem [#allocation2], %s2805_s17  ;;  %p4207_p7 = pnand %p3541_p13, %p84_p11 }
  0x68   : > { %s620_s13 = sshll.u32 %s613_s10, 4  ;;  %s4213_s15 = scalar_lea.sflag [#allocation3], %s609_s26  ;;  %s4211_s13 = int_to_ptr.vmem [resolvable:$true] %s620_s13 }
  0x69   : > { %p3785_p8 = pneg %p4207_p7 }
  0x6b   : > { %s4205_s8 = scalar_lea.hbm %s5105_s24, %s2918_s29  ;;  %s3788_s17 = scalar_lea.hbm %s5105_s24, 4096 }
  0x6c   : > { %s3783_s27 = scalar_lea.hbm %s4205_s8, 2048  ;;  %p3789_p11 = scmp.lt.s32.totalorder %s4205_s8, %s5105_s24 }
  0x6d   : > { %p3784_p5 = scmp.ne.s32.totalorder %s4205_s8, %s3783_s27  ;;  %p3790_p0 = scmp.lt.s32.totalorder %s3788_s17, %s3783_s27 }
  0x6f   : > { %p3786_p9 = pnand %p3785_p8, %p3784_p5  ;;  %p3791_p13 = por %p3790_p0, %p3789_p11 }
  0x71   : > { %p3787_p10 = pneg %p3786_p9 }
  0x73   : > { %p3792_p4 = pnand %p3791_p13, %p3787_p10 }
  0x75   : > { %3795 = shalt.err (!%p3792_p4)
}
  0x76   : > { %s3796_s26 = scalar_lea.vmem %s4211_s13, 2048  ;;  %s3952_s20 = smov [#allocation2]  }
  0x77   : > { %p3797_p1 = scmp.ne.s32.totalorder %s4211_s13, %s3796_s26  ;;  %s3801_s28 = sshll.u32 %s3952_s20, 4  ;;  %s3802_s28 = int_to_ptr.vmem [resolvable:$false] %s3801_s28 }
  0x78   : > { %s3803_s1 = scalar_lea.vmem %s3802_s28, 4096  ;;  %p3804_p9 = scmp.lt.s32.totalorder %s4211_s13, %s3802_s28 }
  0x79   : > { %p3799_p2 = pnand %p3797_p1, %p3785_p8  ;;  %p3805_p6 = scmp.lt.s32.totalorder %s3803_s1, %s3796_s26 }
  0x7b   : > { %p3800_p5 = pneg %p3799_p2  ;;  %p3806_p12 = por %p3805_p6, %p3804_p9 }
  0x7d   : > { %p3807_p3 = pnand %p3806_p12, %p3800_p5 }
  0x7f   : > { %3810 = shalt.err (!%p3807_p3)
}
  0x80   : > { %s5107_s27 = smov 8   ;;  %s5108_s29 = smov 128  }
  0x81   : > { %3525 = dma.hbm_to_vmem [thread:$0]  (!%p4207_p7), %s4205_s8, 2048, %s4211_s13, %s4213_s15, %s5108_s29, %s5108_s29, %s5107_s27  }
  0x82   : > { %p5109_p1 = scmp.ne.s32.totalorder %s5092_s23, 0 }
  0x83   : > { %s4240_s20 = sand.u32 (!%p5109_p1), 1, %s3935_s30   ;;  %p5110_p3 = scmp.ne.s32.totalorder (!%p5109_p1), %s5102_s16, 0 }
  0x84   : > { %632 = sbr.rel (%p5109_p1) target bundleno = 1937 (0x791), region = 88  ;;  %s4243_s28 = sshll.u32 (!%p5109_p1), %s4240_s20, 7 }
  0x85   : > { %s635_s3 = scalar_lea.sflag (!%p5109_p1), [#allocation3], %s4240_s20  ;;  %s4247_s17 = scalar_lea.vmem (!%p5109_p1), [#allocation2], %s4243_s28 }
  0x89   : > { %3906 = dma.done.wait (%p5110_p3), %s635_s3, 2048  }
  0x8a   : > { %3908 = vsyncadd (%p5110_p3), %s635_s3, 4294965248  ;;  %p5111_p4 = scmp.eq.s32.totalorder %s4079_s2, 0 }
  0x8c   : > { %3910 = dma.done.wait (%p5111_p4), [#allocation6], 1024   ;;  %p5112_p12 = pmov %p5111_p4 }
  0x8d   : > { %p5113_p6 = pmov %p5111_p4 }
  0x8e   : > { %3912 = vsyncadd (%p5112_p12), [#allocation6], 4294966272 }
  0x8f   : > { %3914 = dma.done.wait (%p5113_p6), [#allocation9], 2560   ;;  %p5114_p2 = pmov %p5111_p4 }
  0x91   : > { %3916 = vsyncadd (%p5114_p2), [#allocation9], 4294964736  ;;  %p5115_p7 = pmov %p5114_p2 }
  0x92   : > { %p5116_p8 = pmov %p5114_p2 }
  0x93   : > { %3918 = dma.done.wait (%p5115_p7), [#allocation12], 512  }
  0x94   : > { %3920 = vsyncadd (%p5116_p8), [#allocation12], 4294966784  ;;  %s2818_s8 = sshll.u32 %s4079_s2, 4  ;;  %s5117_s16 = sld [smem:[#allocation28_spill]]  ;;  %v1162_v36 = vld [vmem:[#allocation5 + $0x18] sm:$0xff]  ;;  %vm949_vm0 = vcmask 261120  }
  0x95   : > { %p729_p10 = scmp.lt.s32.totalorder %s2818_s8, 31  ;;  %s5118_s3 = sld [smem:[#allocation26_spill]]  ;;  %v1161_v48 = vld [vmem:[#allocation5 + $0x10] sm:$0xff]  ;;  %v1160_v52 = vld [vmem:[#allocation5 + $0x8] sm:$0xff]  ;;  %v1159_v56 = vld [vmem:[#allocation5] sm:$0xff] }
  0x96   : > { %s5119_s4 = sld [smem:[#allocation30_spill]]  ;;  %s4453_s29 = scalar_lea.vmem [#allocation14], %s4243_s28 }
  0x97   : > { %s5133_s8 = smov (!%p729_p10, %s2818_s8), 31  ;;  %s5120_s23 = sld [smem:[#allocation29_spill]] }
  0x98   : > { %s2819_s13 = sshll.u32 %s5133_s8, 3  ;;  %s2552_s15 = sand.u32 1, %s4079_s2  }
  0x99   : > { %s2587_s26 = sshll.u32 %s4453_s29, 4  ;;  %s4917_s1 = scalar_lea.sflag [#allocation15], %s2552_s15  ;;  %s4915_s26 = int_to_ptr.vmem [resolvable:$true] %s2587_s26 }
  0x9a   : > { %v769_v0 = vld [vmem:[%s5117_s16 + $0x78] sm:$0xff]  ;;  %v768_v1 = vld [vmem:[%s5117_s16 + $0x70] sm:$0xff]  ;;  %v767_v2 = vld [vmem:[%s5117_s16 + $0x68] sm:$0xff]  ;;  %s3811_s27 = scalar_lea.vmem %s4915_s26, 2048  ;;  %p5121_p0 = scmp.ne.s32.totalorder %s5103_s6, 0 }
  0x9b   : > { %3118 = vmatprep.subr.mxu0 %v769_v0  ;;  %s4278_s24 = scalar_lea.vmem %s5118_s3, %s2819_s13  ;;  %v766_v3 = vld [vmem:[%s5117_s16 + $0x60] sm:$0xff]  ;;  %v765_v5 = vld [vmem:[%s5117_s16 + $0x58] sm:$0xff]  ;;  %v764_v6 = vld [vmem:[%s5117_s16 + $0x50] sm:$0xff]  ;;  %p3812_p11 = scmp.ne.s32.totalorder %s4915_s26, %s3811_s27 }
  0x9c   : > { %3119 = vmatpush3.msra.mxu0 %v769_v0  ;;  %v738_v4 = vld [vmem:[%s4278_s24] sm:$0xff]  ;;  %v763_v7 = vld [vmem:[%s5117_s16 + $0x48] sm:$0xff]  ;;  %v761_v9 = vld [vmem:[%s5117_s16 + $0x38] sm:$0xff] }
  0x9d   : > { %3120 = vmatprep.subr.mxu0 %v768_v1  ;;  %3150 = vmatprep.mubr.f32.mxu0 %v738_v4  ;;  %v762_v8 = vld [vmem:[%s5117_s16 + $0x40] sm:$0xff]  ;;  %v760_v10 = vld [vmem:[%s5117_s16 + $0x30] sm:$0xff]  ;;  %v759_v11 = vld [vmem:[%s5117_s16 + $0x28] sm:$0xff]  ;;  %p3813_p13 = pnand %p3812_p11, %p5121_p0 }
  0x9e   : > { %3121 = vmatpush3.msra.mxu0 %v768_v1  ;;  %v758_v12 = vld [vmem:[%s5117_s16 + $0x20] sm:$0xff]  ;;  %v757_v13 = vld [vmem:[%s5117_s16 + $0x18] sm:$0xff]  ;;  %v756_v14 = vld [vmem:[%s5117_s16 + $0x10] sm:$0xff] }
  0x9f   : > { %3122 = vmatprep.subr.mxu0 %v767_v2  ;;  %v755_v15 = vld [vmem:[%s5117_s16 + $0x8] sm:$0xff]  ;;  %v754_v16 = vld [vmem:[%s5117_s16] sm:$0xff]  ;;  %v740_v18 = vld [vmem:[%s4278_s24 + $0x10] sm:$0xff]  ;;  %p3814_p5 = pneg %p3813_p13 }
  0xa0   : > { %3123 = vmatpush3.msra.mxu0 %v767_v2  ;;  %v739_v17 = vld [vmem:[%s4278_s24 + $0x8] sm:$0xff]  ;;  %v741_v19 = vld [vmem:[%s4278_s24 + $0x18] sm:$0xff]  ;;  %v742_v20 = vld [vmem:[%s4278_s24 + $0x20] sm:$0xff] }
  0xa1   : > { %3124 = vmatprep.subr.mxu0 %v766_v3  ;;  %v743_v21 = vld [vmem:[%s4278_s24 + $0x28] sm:$0xff]  ;;  %v744_v22 = vld [vmem:[%s4278_s24 + $0x30] sm:$0xff]  ;;  %v745_v23 = vld [vmem:[%s4278_s24 + $0x38] sm:$0xff] }
  0xa2   : > { %3125 = vmatpush3.msra.mxu0 %v766_v3  ;;  %v746_v24 = vld [vmem:[%s4278_s24 + $0x40] sm:$0xff]  ;;  %v747_v25 = vld [vmem:[%s4278_s24 + $0x48] sm:$0xff]  ;;  %v748_v26 = vld [vmem:[%s4278_s24 + $0x50] sm:$0xff] }
  0xa3   : > { %3126 = vmatprep.subr.mxu0 %v765_v5  ;;  %v749_v27 = vld [vmem:[%s4278_s24 + $0x58] sm:$0xff]  ;;  %v750_v28 = vld [vmem:[%s4278_s24 + $0x60] sm:$0xff]  ;;  %v751_v29 = vld [vmem:[%s4278_s24 + $0x68] sm:$0xff] }
  0xa4   : > { %3127 = vmatpush3.msra.mxu0 %v765_v5  ;;  %v752_v30 = vld [vmem:[%s4278_s24 + $0x70] sm:$0xff]  ;;  %v753_v31 = vld [vmem:[%s4278_s24 + $0x78] sm:$0xff]  ;;  %v939_v34 = vld [vmem:[%s5119_s4 + $0x8] sm:$0xff]  ;;  %s4457_s24 = scalar_lea.vmem [#allocation16], %s4243_s28 }
  0xa5   : > { %3128 = vmatprep.subr.mxu0 %v764_v6  ;;  %v941_v32 = vld [vmem:[%s5119_s4 + $0x18] sm:$0xff]  ;;  %v940_v33 = vld [vmem:[%s5119_s4 + $0x10] sm:$0xff]  ;;  %v938_v35 = vld [vmem:[%s5119_s4] sm:$0xff] }
  0xa6   : > { %3129 = vmatpush3.msra.mxu0 %v764_v6  ;;  %3174 = vmatprep.subr.mxu1 %v941_v32  ;;  %v4350_v37 = vld [vmem:[%s5120_s23] ss:$0 sm:$0xff]  ;;  %s4906_s23 = sshll.u32 %s4079_s2, 11  ;;  %s3953_s2 = smov [#allocation14]  }
  0xa7   : > { %3130 = vmatprep.subr.mxu0 %v763_v7  ;;  %3175 = vmatpush3.msra.mxu1 %v941_v32  ;;  %s4912_s13 = scalar_lea.hbm %s5063_s18, %s4906_s23 }
  0xa8   : > { %3131 = vmatpush3.msra.mxu0 %v763_v7  ;;  %3176 = vmatprep.subr.mxu1 %v940_v33 }
  0xa9   : > { %3132 = vmatprep.subr.mxu0 %v762_v8  ;;  %3177 = vmatpush3.msra.mxu1 %v940_v33 }
  0xaa   : > { %3133 = vmatpush3.msra.mxu0 %v762_v8  ;;  %3178 = vmatprep.subr.mxu1 %v939_v34 }
  0xab   : > { %3134 = vmatprep.subr.mxu0 %v761_v9  ;;  %3179 = vmatpush3.msra.mxu1 %v939_v34 }
  0xac   : > { %3135 = vmatpush3.msra.mxu0 %v761_v9  ;;  %3180 = vmatprep.subr.mxu1 %v938_v35 }
  0xad   : > { %3136 = vmatprep.subr.mxu0 %v760_v10  ;;  %3181 = vmatpush3.msra.mxu1 %v938_v35 }
  0xae   : > { %3137 = vmatpush3.msra.mxu0 %v760_v10  ;;  %3206 = vmatprep.subr.mxu1 %v1162_v36 }
  0xaf   : > { %3138 = vmatprep.subr.mxu0 %v759_v11 }
  0xb0   : > { %3139 = vmatpush3.msra.mxu0 %v759_v11 }
  0xb1   : > { %3140 = vmatprep.subr.mxu0 %v758_v12 }
  0xb2   : > { %3141 = vmatpush3.msra.mxu0 %v758_v12 }
  0xb3   : > { %3142 = vmatprep.subr.mxu0 %v757_v13 }
  0xb4   : > { %3143 = vmatpush3.msra.mxu0 %v757_v13 }
  0xb5   : > { %3144 = vmatprep.subr.mxu0 %v756_v14 }
  0xb6   : > { %3145 = vmatpush3.msra.mxu0 %v756_v14 }
  0xb7   : > { %3146 = vmatprep.subr.mxu0 %v755_v15 }
  0xb8   : > { %3147 = vmatpush3.msra.mxu0 %v755_v15 }
  0xb9   : > { %3148 = vmatprep.subr.mxu0 %v754_v16 }
  0xba   : > { %3149 = vmatpush3.msra.mxu0 %v754_v16 }
  0xbb   : > { %3151 = vmatmul.mubr.f32.vlgmr.msra.gmra.mxu0 %v739_v17 }
  0xbc   : > { %3153 = vmatprep.mubr.f32.mxu0 %v740_v18 }
  0xbf   : > { %3154 = vmatmul.mubr.f32.gmra.mxu0 %v741_v19 }
  0xc0   : > { %3156 = vmatprep.mubr.f32.mxu0 %v742_v20 }
  0xc3   : > { %3157 = vmatmul.mubr.f32.gmra.mxu0 %v743_v21 }
  0xc4   : > { %3159 = vmatprep.mubr.f32.mxu0 %v744_v22 }
  0xc7   : > { %3160 = vmatmul.mubr.f32.gmra.mxu0 %v745_v23 }
  0xc8   : > { %3162 = vmatprep.mubr.f32.mxu0 %v746_v24 }
  0xcb   : > { %3163 = vmatmul.mubr.f32.gmra.mxu0 %v747_v25  ;;  %v1366_v25 = vld [vmem:[#allocation7 + $0x18] sm:$0xff] }
  0xcc   : > { %3165 = vmatprep.mubr.f32.mxu0 %v748_v26  ;;  %3238 = vmatprep.subr.mxu0 %v1366_v25  ;;  %v1365_v26 = vld [vmem:[#allocation7 + $0x10] sm:$0xff] }
  0xcd   : > { %3239 = vmatpush3.msra.mxu0 %v1366_v25 }
  0xce   : > { %3240 = vmatprep.subr.mxu0 %v1365_v26 }
  0xcf   : > { %3166 = vmatmul.mubr.f32.gmra.mxu0 %v749_v27  ;;  %v1364_v27 = vld [vmem:[#allocation7 + $0x8] sm:$0xff] }
  0xd0   : > { %3168 = vmatprep.mubr.f32.mxu0 %v750_v28  ;;  %3241 = vmatpush3.msra.mxu0 %v1365_v26  ;;  %v1363_v28 = vld [vmem:[#allocation7] sm:$0xff] }
  0xd1   : > { %3242 = vmatprep.subr.mxu0 %v1364_v27 }
  0xd2   : > { %3243 = vmatpush3.msra.mxu0 %v1364_v27 }
  0xd3   : > { %3169 = vmatmul.mubr.f32.gmra.mxu0 %v751_v29  ;;  %3244 = vmatprep.subr.mxu0 %v1363_v28  ;;  %v4387_v29 = vld [vmem:[%s5050_s5] ss:$0 sm:$0xff] }
  0xd4   : > { %3171 = vmatprep.mubr.f32.mxu0 %v752_v30  ;;  %3245 = vmatpush3.msra.mxu0 %v1363_v28 }
  0xd7   : > { %3172 = vmatmul.mubr.f32.gmra.mxu0 %v753_v31 }
 0x17b   : > { %v3152_v38 = vpop.f32.mrf.mxu0 }
 0x17c   : > { %v849_v39 = vadd.f32 %v3152_v38, %v4350_v37 }
 0x17d   : > { %v843_v40 = vpop.f32.mrf.mxu0 }
 0x17e   : > { %v844_v41 = vadd.f32 %v4350_v37, %v843_v40  ;;  %v923_v44 = vmax.f32 %v849_v39, 0.0 }
 0x17f   : > { %v3155_v42 = vpop.f32.mrf.mxu0 }
 0x180   : > { %v922_v43 = vmax.f32 %v844_v41, 0.0  ;;  %v859_v45 = vadd.f32 %v3155_v42, %v4350_v37 }
 0x181   : > { %v853_v46 = vpop.f32.mrf.mxu0 }
 0x182   : > { %v854_v47 = vadd.f32 %v4350_v37, %v853_v46  ;;  %3182 = vmatprep.mubr.msk.f32.mxu1 %vm949_vm0, %v922_v43  ;;  %v925_v53 = vmax.f32 %v859_v45, 0.0 }
 0x183   : > { %v3158_v49 = vpop.f32.mrf.mxu0  ;;  %3183 = vmatmul.mubr.msk.f32.vlgmr.msra.gmra.mxu1 %vm949_vm0, %v923_v44 }
 0x184   : > { %v924_v50 = vmax.f32 %v854_v47, 0.0  ;;  %v869_v51 = vadd.f32 %v3158_v49, %v4350_v37  ;;  %3207 = vmatpush3.msra.mxu1 %v1162_v36 }
 0x185   : > { %v863_v54 = vpop.f32.mrf.mxu0  ;;  %3208 = vmatprep.subr.mxu1 %v1161_v48 }
 0x186   : > { %v864_v55 = vadd.f32 %v4350_v37, %v863_v54  ;;  %3185 = vmatprep.mubr.msk.f32.mxu1 %vm949_vm0, %v924_v50  ;;  %3209 = vmatpush3.msra.mxu1 %v1161_v48  ;;  %v927_v57 = vmax.f32 %v869_v51, 0.0 }
 0x187   : > { %v3161_v58 = vpop.f32.mrf.mxu0  ;;  %3186 = vmatmul.mubr.msk.f32.gmra.mxu1 %vm949_vm0, %v925_v53  ;;  %3210 = vmatprep.subr.mxu1 %v1160_v52 }
 0x188   : > { %v926_v59 = vmax.f32 %v864_v55, 0.0  ;;  %v879_v60 = vadd.f32 %v3161_v58, %v4350_v37  ;;  %3211 = vmatpush3.msra.mxu1 %v1160_v52 }
 0x189   : > { %v873_v61 = vpop.f32.mrf.mxu0  ;;  %3212 = vmatprep.subr.mxu1 %v1159_v56 }
 0x18a   : > { %v874_v62 = vadd.f32 %v4350_v37, %v873_v61  ;;  %3188 = vmatprep.mubr.msk.f32.mxu1 %vm949_vm0, %v926_v59  ;;  %3213 = vmatpush3.msra.mxu1 %v1159_v56  ;;  %v929_v63 = vmax.f32 %v879_v60, 0.0 }
 0x18b   : > { %v3164_v0 = vpop.f32.mrf.mxu0  ;;  %3189 = vmatmul.mubr.msk.f32.gmra.mxu1 %vm949_vm0, %v927_v57 }
 0x18c   : > { %v928_v1 = vmax.f32 %v874_v62, 0.0  ;;  %v889_v2 = vadd.f32 %v3164_v0, %v4350_v37 }
 0x18d   : > { %v883_v3 = vpop.f32.mrf.mxu0 }
 0x18e   : > { %v884_v4 = vadd.f32 %v4350_v37, %v883_v3  ;;  %3191 = vmatprep.mubr.msk.f32.mxu1 %vm949_vm0, %v928_v1  ;;  %v931_v5 = vmax.f32 %v889_v2, 0.0 }
 0x18f   : > { %v3167_v6 = vpop.f32.mrf.mxu0  ;;  %3192 = vmatmul.mubr.msk.f32.gmra.mxu1 %vm949_vm0, %v929_v63 }
 0x190   : > { %v930_v7 = vmax.f32 %v884_v4, 0.0  ;;  %v899_v8 = vadd.f32 %v3167_v6, %v4350_v37 }
 0x191   : > { %v893_v9 = vpop.f32.mrf.mxu0 }
 0x192   : > { %v894_v10 = vadd.f32 %v4350_v37, %v893_v9  ;;  %3194 = vmatprep.mubr.msk.f32.mxu1 %vm949_vm0, %v930_v7  ;;  %v933_v11 = vmax.f32 %v899_v8, 0.0 }
 0x193   : > { %v3170_v12 = vpop.f32.mrf.mxu0  ;;  %3195 = vmatmul.mubr.msk.f32.gmra.mxu1 %vm949_vm0, %v931_v5 }
 0x194   : > { %v932_v13 = vmax.f32 %v894_v10, 0.0  ;;  %v909_v14 = vadd.f32 %v3170_v12, %v4350_v37 }
 0x195   : > { %v903_v15 = vpop.f32.mrf.mxu0 }
 0x196   : > { %v904_v16 = vadd.f32 %v4350_v37, %v903_v15  ;;  %3197 = vmatprep.mubr.msk.f32.mxu1 %vm949_vm0, %v932_v13  ;;  %v935_v17 = vmax.f32 %v909_v14, 0.0  ;;  %v4440_v14 = vld [vmem:[%s5052_s7] ss:$0 sm:$0xff] }
 0x197   : > { %v3173_v18 = vpop.f32.mrf.mxu0  ;;  %3198 = vmatmul.mubr.msk.f32.gmra.mxu1 %vm949_vm0, %v933_v11  ;;  %v4445_v15 = vld [vmem:[%s5054_s9] ss:$0 sm:$0xff] }
 0x198   : > { %v934_v19 = vmax.f32 %v904_v16, 0.0  ;;  %v919_v20 = vadd.f32 %v3173_v18, %v4350_v37  ;;  %v1519_v16 = vlaneseq }
 0x199   : > { %v913_v21 = vpop.f32.mrf.mxu0 }
 0x19a   : > { %v914_v22 = vadd.f32 %v4350_v37, %v913_v21  ;;  %3200 = vmatprep.mubr.msk.f32.mxu1 %vm949_vm0, %v934_v19  ;;  %v937_v23 = vmax.f32 %v919_v20, 0.0 }
 0x19b   : > { %3201 = vmatmul.mubr.msk.f32.gmra.mxu1 %vm949_vm0, %v935_v17 }
 0x19c   : > { %v936_v24 = vmax.f32 %v914_v22, 0.0 }
 0x19e   : > { %3203 = vmatprep.mubr.msk.f32.mxu1 %vm949_vm0, %v936_v24  ;;  %v1522_v24 = vld [vmem:[%s4247_s17] sm:$0xff] }
 0x19f   : > { %3204 = vmatmul.mubr.msk.f32.gmra.mxu1 %vm949_vm0, %v937_v23  ;;  %v4449_v23 = vand.u32 127, %v1519_v16 }
 0x1a1   : > { %vm1521_vm1 = vcmp.lt.s32.totalorder %v4449_v23, 16  ;;  %v4728_v23 = vld [vmem:[%s5056_s11 + $0x68] sm:$0xff] }
 0x243   : > { %v3184_v30 = vpop.f32.mrf.mxu1 }
 0x244   : > { %v1070_v31 = vadd.f32 %v3184_v30, %v4387_v29 }
 0x245   : > { %v1064_v32 = vpop.f32.mrf.mxu1 }
 0x246   : > { %v1065_v33 = vadd.f32 %v4387_v29, %v1064_v32  ;;  %v1144_v36 = vmax.f32 %v1070_v31, 0.0 }
 0x247   : > { %v3187_v34 = vpop.f32.mrf.mxu1 }
 0x248   : > { %v1143_v35 = vmax.f32 %v1065_v33, 0.0  ;;  %v1080_v37 = vadd.f32 %v3187_v34, %v4387_v29 }
 0x249   : > { %v1074_v38 = vpop.f32.mrf.mxu1 }
 0x24a   : > { %v1075_v39 = vadd.f32 %v4387_v29, %v1074_v38  ;;  %3214 = vmatprep.mubr.msk.f32.mxu1 %vm949_vm0, %v1143_v35  ;;  %3246 = vmatprep.mubr.msk.f32.mxu0 %vm949_vm0, %v1143_v35  ;;  %v1146_v42 = vmax.f32 %v1080_v37, 0.0  ;;  %v1524_v35 = vld [vmem:[%s4247_s17 + $0x10] sm:$0xff] }
 0x24b   : > { %v3190_v40 = vpop.f32.mrf.mxu1  ;;  %3215 = vmatmul.mubr.msk.f32.vlgmr.msra.gmra.mxu1 %vm949_vm0, %v1144_v36  ;;  %3247 = vmatmul.mubr.msk.f32.vlgmr.msra.gmra.mxu0 %vm949_vm0, %v1144_v36 }
 0x24c   : > { %v1145_v41 = vmax.f32 %v1075_v39, 0.0  ;;  %v1090_v43 = vadd.f32 %v3190_v40, %v4387_v29  ;;  %v1525_v40 = vld [vmem:[%s4247_s17 + $0x18] sm:$0xff] }
 0x24d   : > { %v1084_v44 = vpop.f32.mrf.mxu1 }
 0x24e   : > { %v1085_v45 = vadd.f32 %v4387_v29, %v1084_v44  ;;  %3217 = vmatprep.mubr.msk.f32.mxu1 %vm949_vm0, %v1145_v41  ;;  %3249 = vmatprep.mubr.msk.f32.mxu0 %vm949_vm0, %v1145_v41  ;;  %v1148_v48 = vmax.f32 %v1090_v43, 0.0 }
 0x24f   : > { %v3193_v46 = vpop.f32.mrf.mxu1  ;;  %3218 = vmatmul.mubr.msk.f32.gmra.mxu1 %vm949_vm0, %v1146_v42  ;;  %3250 = vmatmul.mubr.msk.f32.gmra.mxu0 %vm949_vm0, %v1146_v42 }
 0x250   : > { %v1147_v47 = vmax.f32 %v1085_v45, 0.0  ;;  %v1100_v49 = vadd.f32 %v3193_v46, %v4387_v29 }
 0x251   : > { %v1094_v50 = vpop.f32.mrf.mxu1 }
 0x252   : > { %v1095_v51 = vadd.f32 %v4387_v29, %v1094_v50  ;;  %3220 = vmatprep.mubr.msk.f32.mxu1 %vm949_vm0, %v1147_v47  ;;  %3252 = vmatprep.mubr.msk.f32.mxu0 %vm949_vm0, %v1147_v47  ;;  %v1150_v54 = vmax.f32 %v1100_v49, 0.0  ;;  %v1526_v49 = vld [vmem:[%s4247_s17 + $0x20] sm:$0xff] }
 0x253   : > { %v3196_v52 = vpop.f32.mrf.mxu1  ;;  %3221 = vmatmul.mubr.msk.f32.gmra.mxu1 %vm949_vm0, %v1148_v48  ;;  %3253 = vmatmul.mubr.msk.f32.gmra.mxu0 %vm949_vm0, %v1148_v48 }
 0x254   : > { %v1149_v53 = vmax.f32 %v1095_v51, 0.0  ;;  %v1110_v55 = vadd.f32 %v3196_v52, %v4387_v29 }
 0x255   : > { %v1104_v56 = vpop.f32.mrf.mxu1 }
 0x256   : > { %v1105_v57 = vadd.f32 %v4387_v29, %v1104_v56  ;;  %3223 = vmatprep.mubr.msk.f32.mxu1 %vm949_vm0, %v1149_v53  ;;  %3255 = vmatprep.mubr.msk.f32.mxu0 %vm949_vm0, %v1149_v53  ;;  %v1152_v60 = vmax.f32 %v1110_v55, 0.0  ;;  %v1527_v56 = vld [vmem:[%s4247_s17 + $0x28] sm:$0xff] }
 0x257   : > { %v3199_v58 = vpop.f32.mrf.mxu1  ;;  %3224 = vmatmul.mubr.msk.f32.gmra.mxu1 %vm949_vm0, %v1150_v54  ;;  %3256 = vmatmul.mubr.msk.f32.gmra.mxu0 %vm949_vm0, %v1150_v54 }
 0x258   : > { %v1151_v59 = vmax.f32 %v1105_v57, 0.0  ;;  %v1120_v61 = vadd.f32 %v3199_v58, %v4387_v29 }
 0x259   : > { %v1114_v62 = vpop.f32.mrf.mxu1 }
 0x25a   : > { %v1115_v63 = vadd.f32 %v4387_v29, %v1114_v62  ;;  %3226 = vmatprep.mubr.msk.f32.mxu1 %vm949_vm0, %v1151_v59  ;;  %3258 = vmatprep.mubr.msk.f32.mxu0 %vm949_vm0, %v1151_v59  ;;  %v1154_v2 = vmax.f32 %v1120_v61, 0.0 }
 0x25b   : > { %v3202_v0 = vpop.f32.mrf.mxu1  ;;  %3227 = vmatmul.mubr.msk.f32.gmra.mxu1 %vm949_vm0, %v1152_v60  ;;  %3259 = vmatmul.mubr.msk.f32.gmra.mxu0 %vm949_vm0, %v1152_v60 }
 0x25c   : > { %v1153_v1 = vmax.f32 %v1115_v63, 0.0  ;;  %v1130_v3 = vadd.f32 %v3202_v0, %v4387_v29  ;;  %v1528_v63 = vld [vmem:[%s4247_s17 + $0x30] sm:$0xff] }
 0x25d   : > { %v1124_v4 = vpop.f32.mrf.mxu1 }
 0x25e   : > { %v1125_v5 = vadd.f32 %v4387_v29, %v1124_v4  ;;  %3229 = vmatprep.mubr.msk.f32.mxu1 %vm949_vm0, %v1153_v1  ;;  %3261 = vmatprep.mubr.msk.f32.mxu0 %vm949_vm0, %v1153_v1  ;;  %v1156_v8 = vmax.f32 %v1130_v3, 0.0  ;;  %v1529_v4 = vld [vmem:[%s4247_s17 + $0x38] sm:$0xff] }
 0x25f   : > { %v3205_v6 = vpop.f32.mrf.mxu1  ;;  %3230 = vmatmul.mubr.msk.f32.gmra.mxu1 %vm949_vm0, %v1154_v2  ;;  %3262 = vmatmul.mubr.msk.f32.gmra.mxu0 %vm949_vm0, %v1154_v2 }
 0x260   : > { %v1155_v7 = vmax.f32 %v1125_v5, 0.0  ;;  %v1140_v9 = vadd.f32 %v3205_v6, %v4387_v29 }
 0x261   : > { %v1134_v10 = vpop.f32.mrf.mxu1 }
 0x262   : > { %v1135_v11 = vadd.f32 %v4387_v29, %v1134_v10  ;;  %3232 = vmatprep.mubr.msk.f32.mxu1 %vm949_vm0, %v1155_v7  ;;  %3264 = vmatprep.mubr.msk.f32.mxu0 %vm949_vm0, %v1155_v7  ;;  %v1158_v13 = vmax.f32 %v1140_v9, 0.0  ;;  %v1523_v29 = vld [vmem:[%s4247_s17 + $0x8] sm:$0xff] }
 0x263   : > { %3233 = vmatmul.mubr.msk.f32.gmra.mxu1 %vm949_vm0, %v1156_v8  ;;  %3265 = vmatmul.mubr.msk.f32.gmra.mxu0 %vm949_vm0, %v1156_v8 }
 0x264   : > { %v1157_v12 = vmax.f32 %v1135_v11, 0.0 }
 0x266   : > { %3235 = vmatprep.mubr.msk.f32.mxu1 %vm949_vm0, %v1157_v12  ;;  %3267 = vmatprep.mubr.msk.f32.mxu0 %vm949_vm0, %v1157_v12 }
 0x267   : > { %3236 = vmatmul.mubr.msk.f32.gmra.mxu1 %vm949_vm0, %v1158_v13  ;;  %3268 = vmatmul.mubr.msk.f32.gmra.mxu0 %vm949_vm0, %v1158_v13  ;;  %v1530_v13 = vld [vmem:[%s4247_s17 + $0x40] sm:$0xff] }
 0x30b   : > { %v3216_v17 = vpop.f32.mrf.mxu1  ;;  %v3248_v18 = vpop.f32.mrf.mxu0 }
 0x30c   : > { %v1290_v19 = vadd.f32 %v3216_v17, %v4440_v14  ;;  %v1446_v20 = vadd.f32 %v3248_v18, %v4445_v15 }
 0x30d   : > { %v1284_v21 = vpop.f32.mrf.mxu1  ;;  %v1440_v22 = vpop.f32.mrf.mxu0 }
 0x30e   : > { %2516 = vst [vmem:[%s4453_s29 + $0x8] sm:$0xff] %v1290_v19  ;;  %2532 = vst [vmem:[%s4457_s24 + $0x8] sm:$0xff] %v1446_v20  ;;  %v1285_v25 = vadd.f32 %v4440_v14, %v1284_v21  ;;  %v1441_v26 = vadd.f32 %v4445_v15, %v1440_v22  ;;  %v1539_v39 = vadd.f32 %v1523_v29, %v1290_v19  ;;  %v1531_v22 = vld [vmem:[%s4247_s17 + $0x48] sm:$0xff] }
 0x30f   : > { %v3219_v27 = vpop.f32.mrf.mxu1  ;;  %v3251_v28 = vpop.f32.mrf.mxu0 }
 0x310   : > { %2515 = vst [vmem:[%s4453_s29] sm:$0xff] %v1285_v25  ;;  %2531 = vst [vmem:[%s4457_s24] sm:$0xff] %v1441_v26  ;;  %v1300_v30 = vadd.f32 %v3219_v27, %v4440_v14  ;;  %v1456_v31 = vadd.f32 %v3251_v28, %v4445_v15  ;;  %v1538_v32 = vadd.f32 %v1522_v24, %v1285_v25  ;;  %v4494_v53 = vsel %vm1521_vm1, %v1539_v39, -1e+30 }
 0x311   : > { %v1294_v33 = vpop.f32.mrf.mxu1  ;;  %v1450_v34 = vpop.f32.mrf.mxu0 }
 0x312   : > { %2518 = vst [vmem:[%s4453_s29 + $0x18] sm:$0xff] %v1300_v30  ;;  %2534 = vst [vmem:[%s4457_s24 + $0x18] sm:$0xff] %v1456_v31  ;;  %v1295_v36 = vadd.f32 %v4440_v14, %v1294_v33  ;;  %v1451_v37 = vadd.f32 %v4445_v15, %v1450_v34  ;;  %v4475_v38 = vsel %vm1521_vm1, %v1538_v32, -1e+30  ;;  %v1541_v48 = vadd.f32 %v1525_v40, %v1300_v30  ;;  %v1532_v30 = vld [vmem:[%s4247_s17 + $0x50] sm:$0xff] }
 0x313   : > { %v3222_v41 = vpop.f32.mrf.mxu1  ;;  %v3254_v42 = vpop.f32.mrf.mxu0  ;;  %1570 = vmax.xlane.f32.xlu0 %v4475_v38 }
 0x314   : > { %2517 = vst [vmem:[%s4453_s29 + $0x10] sm:$0xff] %v1295_v36  ;;  %2533 = vst [vmem:[%s4457_s24 + $0x10] sm:$0xff] %v1451_v37  ;;  %v1310_v43 = vadd.f32 %v3222_v41, %v4440_v14  ;;  %v1466_v44 = vadd.f32 %v3254_v42, %v4445_v15  ;;  %v1540_v45 = vadd.f32 %v1524_v35, %v1295_v36  ;;  %v4505_v62 = vsel %vm1521_vm1, %v1541_v48, -1e+30  ;;  %v1533_v35 = vld [vmem:[%s4247_s17 + $0x58] sm:$0xff] }
 0x315   : > { %v1304_v46 = vpop.f32.mrf.mxu1  ;;  %v1460_v47 = vpop.f32.mrf.mxu0 }
 0x316   : > { %2520 = vst [vmem:[%s4453_s29 + $0x28] sm:$0xff] %v1310_v43  ;;  %2536 = vst [vmem:[%s4457_s24 + $0x28] sm:$0xff] %v1466_v44  ;;  %v1305_v50 = vadd.f32 %v4440_v14, %v1304_v46  ;;  %v1461_v51 = vadd.f32 %v4445_v15, %v1460_v47  ;;  %v4490_v52 = vsel %vm1521_vm1, %v1540_v45, -1e+30  ;;  %v1543_v3 = vadd.f32 %v1527_v56, %v1310_v43  ;;  %v1534_v45 = vld [vmem:[%s4247_s17 + $0x60] sm:$0xff] }
 0x317   : > { %v3225_v54 = vpop.f32.mrf.mxu1  ;;  %v3257_v55 = vpop.f32.mrf.mxu0  ;;  %1574 = vmax.xlane.f32.xlu1 %v4490_v52  ;;  %1572 = vmax.xlane.f32.xlu0 %v4494_v53 }
 0x318   : > { %2519 = vst [vmem:[%s4453_s29 + $0x20] sm:$0xff] %v1305_v50  ;;  %2535 = vst [vmem:[%s4457_s24 + $0x20] sm:$0xff] %v1461_v51  ;;  %v1320_v57 = vadd.f32 %v3225_v54, %v4440_v14  ;;  %v1476_v58 = vadd.f32 %v3257_v55, %v4445_v15  ;;  %v1542_v59 = vadd.f32 %v1526_v49, %v1305_v50  ;;  %v4530_v18 = vsel %vm1521_vm1, %v1543_v3, -1e+30  ;;  %v1535_v54 = vld [vmem:[%s4247_s17 + $0x68] sm:$0xff] }
 0x319   : > { %v1314_v60 = vpop.f32.mrf.mxu1  ;;  %v1470_v61 = vpop.f32.mrf.mxu0 }
 0x31a   : > { %2522 = vst [vmem:[%s4453_s29 + $0x38] sm:$0xff] %v1320_v57  ;;  %2538 = vst [vmem:[%s4457_s24 + $0x38] sm:$0xff] %v1476_v58  ;;  %v1315_v0 = vadd.f32 %v4440_v14, %v1314_v60  ;;  %v1471_v1 = vadd.f32 %v4445_v15, %v1470_v61  ;;  %v4514_v2 = vsel %vm1521_vm1, %v1542_v59, -1e+30  ;;  %v1545_v12 = vadd.f32 %v1529_v4, %v1320_v57  ;;  %v1536_v61 = vld [vmem:[%s4247_s17 + $0x70] sm:$0xff]  ;;  %v1537_v4 = vld [vmem:[%s4247_s17 + $0x78] sm:$0xff] }
 0x31b   : > { %v3228_v5 = vpop.f32.mrf.mxu1  ;;  %v3260_v6 = vpop.f32.mrf.mxu0  ;;  %1576 = vmax.xlane.f32.xlu1 %v4505_v62  ;;  %1578 = vmax.xlane.f32.xlu0 %v4514_v2  ;;  %s3815_s17 = sshll.u32 %s3953_s2, 4  ;;  %s3816_s17 = int_to_ptr.vmem [resolvable:$false] %s3815_s17 }
 0x31c   : > { %2521 = vst [vmem:[%s4453_s29 + $0x30] sm:$0xff] %v1315_v0  ;;  %2537 = vst [vmem:[%s4457_s24 + $0x30] sm:$0xff] %v1471_v1  ;;  %v1330_v7 = vadd.f32 %v3228_v5, %v4440_v14  ;;  %v1486_v8 = vadd.f32 %v3260_v6, %v4445_v15  ;;  %v1544_v9 = vadd.f32 %v1528_v63, %v1315_v0  ;;  %v4545_v29 = vsel %vm1521_vm1, %v1545_v12, -1e+30  ;;  %v1741_v12 = vld [vmem:[#allocation8 + $0x58] sm:$0xff]  ;;  %s3817_s3 = scalar_lea.vmem %s3816_s17, 4096  ;;  %p3818_p9 = scmp.lt.s32.totalorder %s4915_s26, %s3816_s17 }
 0x31d   : > { %v1324_v10 = vpop.f32.mrf.mxu1  ;;  %v1480_v11 = vpop.f32.mrf.mxu0  ;;  %p3819_p1 = scmp.lt.s32.totalorder %s3817_s3, %s3811_s27 }
 0x31e   : > { %2524 = vst [vmem:[%s4453_s29 + $0x48] sm:$0xff] %v1330_v7  ;;  %2540 = vst [vmem:[%s4457_s24 + $0x48] sm:$0xff] %v1486_v8  ;;  %v1325_v16 = vadd.f32 %v4440_v14, %v1324_v10  ;;  %v1481_v17 = vadd.f32 %v4445_v15, %v1480_v11  ;;  %v4534_v19 = vsel %vm1521_vm1, %v1544_v9, -1e+30  ;;  %v1547_v34 = vadd.f32 %v1531_v22, %v1330_v7  ;;  %v1745_v8 = vld [vmem:[#allocation8 + $0x78] sm:$0xff]  ;;  %v1744_v9 = vld [vmem:[#allocation8 + $0x70] sm:$0xff] }
 0x31f   : > { %v3231_v20 = vpop.f32.mrf.mxu1  ;;  %v3263_v21 = vpop.f32.mrf.mxu0  ;;  %1580 = vmax.xlane.f32.xlu1 %v4530_v18  ;;  %1582 = vmax.xlane.f32.xlu0 %v4534_v19  ;;  %v1743_v10 = vld [vmem:[#allocation8 + $0x68] sm:$0xff]  ;;  %v1742_v11 = vld [vmem:[#allocation8 + $0x60] sm:$0xff]  ;;  %p3820_p3 = por %p3819_p1, %p3818_p9 }
 0x320   : > { %2523 = vst [vmem:[%s4453_s29 + $0x40] sm:$0xff] %v1325_v16  ;;  %2539 = vst [vmem:[%s4457_s24 + $0x40] sm:$0xff] %v1481_v17  ;;  %v1340_v24 = vadd.f32 %v3231_v20, %v4440_v14  ;;  %v1496_v25 = vadd.f32 %v3263_v21, %v4445_v15  ;;  %v1546_v26 = vadd.f32 %v1530_v13, %v1325_v16  ;;  %v4570_v48 = vsel %vm1521_vm1, %v1547_v34, -1e+30  ;;  %v1740_v13 = vld [vmem:[#allocation8 + $0x50] sm:$0xff]  ;;  %v1739_v16 = vld [vmem:[#allocation8 + $0x48] sm:$0xff] }
 0x321   : > { %v1334_v27 = vpop.f32.mrf.mxu1  ;;  %v1490_v28 = vpop.f32.mrf.mxu0  ;;  %3270 = vmatprep.subr.mxu1 %v1745_v8  ;;  %p3821_p4 = pnand %p3820_p3, %p3814_p5 }
 0x322   : > { %2526 = vst [vmem:[%s4453_s29 + $0x58] sm:$0xff] %v1340_v24  ;;  %2542 = vst [vmem:[%s4457_s24 + $0x58] sm:$0xff] %v1496_v25  ;;  %v1335_v31 = vadd.f32 %v4440_v14, %v1334_v27  ;;  %v1491_v32 = vadd.f32 %v4445_v15, %v1490_v28  ;;  %v4554_v33 = vsel %vm1521_vm1, %v1546_v26, -1e+30  ;;  %v1549_v44 = vadd.f32 %v1533_v35, %v1340_v24 }
 0x323   : > { %v3234_v36 = vpop.f32.mrf.mxu1  ;;  %v3266_v37 = vpop.f32.mrf.mxu0  ;;  %1584 = vmax.xlane.f32.xlu1 %v4545_v29  ;;  %1586 = vmax.xlane.f32.xlu0 %v4554_v33 }
 0x324   : > { %2525 = vst [vmem:[%s4453_s29 + $0x50] sm:$0xff] %v1335_v31  ;;  %2541 = vst [vmem:[%s4457_s24 + $0x50] sm:$0xff] %v1491_v32  ;;  %v1350_v39 = vadd.f32 %v3234_v36, %v4440_v14  ;;  %v1506_v40 = vadd.f32 %v3266_v37, %v4445_v15  ;;  %v1548_v41 = vadd.f32 %v1532_v30, %v1335_v31  ;;  %v4585_v60 = vsel %vm1521_vm1, %v1549_v44, -1e+30 }
 0x325   : > { %v1344_v42 = vpop.f32.mrf.mxu1  ;;  %v1500_v43 = vpop.f32.mrf.mxu0  ;;  %3271 = vmatpush3.msra.mxu1 %v1745_v8 }
 0x326   : > { %2528 = vst [vmem:[%s4453_s29 + $0x68] sm:$0xff] %v1350_v39  ;;  %2544 = vst [vmem:[%s4457_s24 + $0x68] sm:$0xff] %v1506_v40  ;;  %v1345_v46 = vadd.f32 %v4440_v14, %v1344_v42  ;;  %v1501_v47 = vadd.f32 %v4445_v15, %v1500_v43  ;;  %v4574_v49 = vsel %vm1521_vm1, %v1548_v41, -1e+30  ;;  %v1551_v3 = vadd.f32 %v1535_v54, %v1350_v39 }
 0x327   : > { %v3237_v50 = vpop.f32.mrf.mxu1  ;;  %v3269_v51 = vpop.f32.mrf.mxu0  ;;  %1588 = vmax.xlane.f32.xlu1 %v4570_v48  ;;  %1590 = vmax.xlane.f32.xlu0 %v4574_v49 }
 0x328   : > { %2527 = vst [vmem:[%s4453_s29 + $0x60] sm:$0xff] %v1345_v46  ;;  %2543 = vst [vmem:[%s4457_s24 + $0x60] sm:$0xff] %v1501_v47  ;;  %v1360_v55 = vadd.f32 %v3237_v50, %v4440_v14  ;;  %v1516_v56 = vadd.f32 %v3269_v51, %v4445_v15  ;;  %v1550_v57 = vadd.f32 %v1534_v45, %v1345_v46  ;;  %v4603_v6 = vsel %vm1521_vm1, %v1551_v3, -1e+30 }
 0x329   : > { %v1354_v58 = vpop.f32.mrf.mxu1  ;;  %v1510_v59 = vpop.f32.mrf.mxu0  ;;  %3272 = vmatprep.subr.mxu1 %v1744_v9 }
 0x32a   : > { %2530 = vst [vmem:[%s4453_s29 + $0x78] sm:$0xff] %v1360_v55  ;;  %2546 = vst [vmem:[%s4457_s24 + $0x78] sm:$0xff] %v1516_v56  ;;  %v1355_v63 = vadd.f32 %v4440_v14, %v1354_v58  ;;  %v1511_v0 = vadd.f32 %v4445_v15, %v1510_v59  ;;  %v4594_v1 = vsel %vm1521_vm1, %v1550_v57, -1e+30  ;;  %v1553_v15 = vadd.f32 %v1537_v4, %v1360_v55 }
 0x32b   : > { %1592 = vmax.xlane.f32.xlu1 %v4585_v60  ;;  %1594 = vmax.xlane.f32.xlu0 %v4594_v1 }
 0x32c   : > { %2529 = vst [vmem:[%s4453_s29 + $0x70] sm:$0xff] %v1355_v63  ;;  %2545 = vst [vmem:[%s4457_s24 + $0x70] sm:$0xff] %v1511_v0  ;;  %v1552_v5 = vadd.f32 %v1536_v61, %v1355_v63  ;;  %v4613_v7 = vsel %vm1521_vm1, %v1553_v15, -1e+30  ;;  %3273 = vmatpush3.msra.mxu1 %v1744_v9  ;;  %v1738_v9 = vld [vmem:[#allocation8 + $0x40] sm:$0xff] }
 0x32d   : > { %3274 = vmatprep.subr.mxu1 %v1743_v10 }
 0x32e   : > { %v4607_v14 = vsel %vm1521_vm1, %v1552_v5, -1e+30  ;;  %3275 = vmatpush3.msra.mxu1 %v1743_v10 }
 0x32f   : > { %1596 = vmax.xlane.f32.xlu1 %v4603_v6  ;;  %1598 = vmax.xlane.f32.xlu0 %v4607_v14 }
 0x330   : > { %3276 = vmatprep.subr.mxu1 %v1742_v11 }
 0x331   : > { %3277 = vmatpush3.msra.mxu1 %v1742_v11 }
 0x332   : > { %3278 = vmatprep.subr.mxu1 %v1741_v12 }
 0x333   : > { %1600 = vmax.xlane.f32.xlu1 %v4613_v7  ;;  %3279 = vmatpush3.msra.mxu1 %v1741_v12 }
 0x334   : > { %3280 = vmatprep.subr.mxu1 %v1740_v13 }
 0x335   : > { %3281 = vmatpush3.msra.mxu1 %v1740_v13 }
 0x336   : > { %3282 = vmatprep.subr.mxu1 %v1739_v16 }
 0x337   : > { %3283 = vmatpush3.msra.mxu1 %v1739_v16  ;;  %v1737_v16 = vld [vmem:[#allocation8 + $0x38] sm:$0xff] }
 0x338   : > { %3284 = vmatprep.subr.mxu1 %v1738_v9 }
 0x339   : > { %3285 = vmatpush3.msra.mxu1 %v1738_v9 }
 0x33a   : > { %3286 = vmatprep.subr.mxu1 %v1737_v16 }
 0x33b   : > { %3287 = vmatpush3.msra.mxu1 %v1737_v16 }
 0x39c   : > { %v1571_v17 = vpop.xlane.xlu0 %1570 }
 0x39d   : > { %v1602_v20 = vsub.f32 %v4475_v38, %v1571_v17 }
 0x39f   : > { %v1618_v21 = vmul.f32 1.442695, %v1602_v20 }
 0x3a0   : > { %v1575_v22 = vpop.xlane.xlu1 %1574  ;;  %v1573_v24 = vpop.xlane.xlu0 %1572 }
 0x3a1   : > { %3589 = vpow2.f32 %v1618_v21  ;;  %v1604_v25 = vsub.f32 %v4490_v52, %v1575_v22  ;;  %v1603_v26 = vsub.f32 %v4494_v53, %v1573_v24 }
 0x3a3   : > { %v1622_v27 = vmul.f32 1.442695, %v1604_v25  ;;  %v1620_v28 = vmul.f32 1.442695, %v1603_v26  ;;  %v1736_v25 = vld [vmem:[#allocation8 + $0x30] sm:$0xff] }
 0x3a4   : > { %v1577_v30 = vpop.xlane.xlu1 %1576  ;;  %v1579_v31 = vpop.xlane.xlu0 %1578  ;;  %3288 = vmatprep.subr.mxu1 %v1736_v25 }
 0x3a5   : > { %3591 = vpow2.f32 %v1622_v27  ;;  %v1605_v32 = vsub.f32 %v4505_v62, %v1577_v30  ;;  %v1606_v34 = vsub.f32 %v4514_v2, %v1579_v31  ;;  %3289 = vmatpush3.msra.mxu1 %v1736_v25 }
 0x3a6   : > { %3593 = vpow2.f32 %v1620_v28 }
 0x3a7   : > { %v1624_v35 = vmul.f32 1.442695, %v1605_v32  ;;  %v1626_v38 = vmul.f32 1.442695, %v1606_v34  ;;  %v1734_v32 = vld [vmem:[#allocation8 + $0x20] sm:$0xff]  ;;  %v1733_v34 = vld [vmem:[#allocation8 + $0x18] sm:$0xff] }
 0x3a8   : > { %v1581_v36 = vpop.xlane.xlu1 %1580  ;;  %v1583_v37 = vpop.xlane.xlu0 %1582 }
 0x3a9   : > { %3595 = vpow2.f32 %v1624_v35  ;;  %v1607_v39 = vsub.f32 %v4530_v18, %v1581_v36  ;;  %v1608_v52 = vsub.f32 %v4534_v19, %v1583_v37 }
 0x3aa   : > { %3597 = vpow2.f32 %v1626_v38 }
 0x3ab   : > { %v1628_v53 = vmul.f32 1.442695, %v1607_v39  ;;  %v1630_v40 = vmul.f32 1.442695, %v1608_v52  ;;  %v1732_v39 = vld [vmem:[#allocation8 + $0x10] sm:$0xff] }
 0x3ac   : > { %v1585_v41 = vpop.xlane.xlu1 %1584  ;;  %v1587_v42 = vpop.xlane.xlu0 %1586 }
 0x3ad   : > { %3599 = vpow2.f32 %v1628_v53  ;;  %v1609_v62 = vsub.f32 %v4545_v29, %v1585_v41  ;;  %v1610_v2 = vsub.f32 %v4554_v33, %v1587_v42  ;;  %v1731_v41 = vld [vmem:[#allocation8 + $0x8] sm:$0xff] }
 0x3ae   : > { %v3590_v43 = vpop.eup %3589  ;;  %3601 = vpow2.f32 %v1630_v40 }
 0x3af   : > { %v1632_v44 = vmul.f32 1.442695, %v1609_v62  ;;  %v1634_v45 = vmul.f32 1.442695, %v1610_v2  ;;  %v4627_v46 = vsel %vm1521_vm1, %v3590_v43, 0.0  ;;  %v1730_v62 = vld [vmem:[#allocation8] sm:$0xff] }
 0x3b0   : > { %v1589_v18 = vpop.xlane.xlu1 %1588  ;;  %1666 = vadd.xlane.f32.xlu0 %v4627_v46  ;;  %v1591_v19 = vpop.xlane.xlu0 %1590 }
 0x3b1   : > { %3603 = vpow2.f32 %v1632_v44  ;;  %v1611_v47 = vsub.f32 %v4570_v48, %v1589_v18  ;;  %v1612_v50 = vsub.f32 %v4574_v49, %v1591_v19  ;;  %v4715_v44 = vld [vmem:[%s5056_s11 + $0x78] sm:$0xff]  ;;  %v4735_v18 = vld [vmem:[%s5056_s11 + $0x60] sm:$0xff] }
 0x3b2   : > { %v3592_v29 = vpop.eup %3591  ;;  %3605 = vpow2.f32 %v1634_v45  ;;  %v4720_v45 = vld [vmem:[%s5056_s11 + $0x70] sm:$0xff]  ;;  %3326 = vmatprep.subr.mxu0 %v4715_v44  ;;  %v4742_v19 = vld [vmem:[%s5056_s11 + $0x58] sm:$0xff] }
 0x3b3   : > { %v3594_v33 = vpop.eup %3593  ;;  %v1636_v51 = vmul.f32 1.442695, %v1611_v47  ;;  %v1638_v54 = vmul.f32 1.442695, %v1612_v50  ;;  %v4634_v55 = vsel %vm1521_vm1, %v3592_v29, 0.0  ;;  %3327 = vmatpush3.msra.mxu0 %v4715_v44  ;;  %v4749_v47 = vld [vmem:[%s5056_s11 + $0x50] sm:$0xff] }
 0x3b4   : > { %v1593_v56 = vpop.xlane.xlu1 %1592  ;;  %1670 = vadd.xlane.f32.xlu0 %v4634_v55  ;;  %v4639_v57 = vsel %vm1521_vm1, %v3594_v33, 0.0  ;;  %v1595_v58 = vpop.xlane.xlu0 %1594  ;;  %3328 = vmatprep.subr.mxu0 %v4720_v45  ;;  %v4756_v50 = vld [vmem:[%s5056_s11 + $0x48] sm:$0xff]  ;;  %v4763_v29 = vld [vmem:[%s5056_s11 + $0x40] sm:$0xff]  ;;  %v4770_v33 = vld [vmem:[%s5056_s11 + $0x38] sm:$0xff] }
 0x3b5   : > { %3607 = vpow2.f32 %v1636_v51  ;;  %v1613_v48 = vsub.f32 %v4585_v60, %v1593_v56  ;;  %1668 = vadd.xlane.f32.xlu1 %v4639_v57  ;;  %v1614_v49 = vsub.f32 %v4594_v1, %v1595_v58  ;;  %3329 = vmatpush3.msra.mxu0 %v4720_v45  ;;  %v4777_v51 = vld [vmem:[%s5056_s11 + $0x30] sm:$0xff]  ;;  %v4791_v56 = vld [vmem:[%s5056_s11 + $0x20] sm:$0xff]  ;;  %v4798_v58 = vld [vmem:[%s5056_s11 + $0x18] sm:$0xff] }
 0x3b6   : > { %v3596_v59 = vpop.eup %3595  ;;  %3609 = vpow2.f32 %v1638_v54  ;;  %3330 = vmatprep.subr.mxu0 %v4728_v23  ;;  %v4784_v54 = vld [vmem:[%s5056_s11 + $0x28] sm:$0xff] }
 0x3b7   : > { %v3598_v61 = vpop.eup %3597  ;;  %v1640_v63 = vmul.f32 1.442695, %v1613_v48  ;;  %v1642_v0 = vmul.f32 1.442695, %v1614_v49  ;;  %v4646_v3 = vsel %vm1521_vm1, %v3596_v59, 0.0  ;;  %3331 = vmatpush3.msra.mxu0 %v4728_v23  ;;  %v4805_v48 = vld [vmem:[%s5056_s11 + $0x10] sm:$0xff] }
 0x3b8   : > { %v1597_v4 = vpop.xlane.xlu1 %1596  ;;  %v4650_v5 = vsel %vm1521_vm1, %v3598_v61, 0.0  ;;  %v1599_v15 = vpop.xlane.xlu0 %1598  ;;  %3332 = vmatprep.subr.mxu0 %v4735_v18  ;;  %v4812_v49 = vld [vmem:[%s5056_s11 + $0x8] sm:$0xff] }
 0x3b9   : > { %3611 = vpow2.f32 %v1640_v63  ;;  %v1615_v60 = vsub.f32 %v4603_v6, %v1597_v4  ;;  %1672 = vadd.xlane.f32.xlu1 %v4646_v3  ;;  %1674 = vadd.xlane.f32.xlu0 %v4650_v5  ;;  %v1616_v1 = vsub.f32 %v4607_v14, %v1599_v15 }
 0x3ba   : > { %v3600_v8 = vpop.eup %3599  ;;  %3613 = vpow2.f32 %v1642_v0  ;;  %3333 = vmatpush3.msra.mxu0 %v4735_v18 }
 0x3bb   : > { %v3602_v10 = vpop.eup %3601  ;;  %v1644_v11 = vmul.f32 1.442695, %v1615_v60  ;;  %v1646_v12 = vmul.f32 1.442695, %v1616_v1  ;;  %v4658_v13 = vsel %vm1521_vm1, %v3600_v8, 0.0  ;;  %3334 = vmatprep.subr.mxu0 %v4742_v19 }
 0x3bc   : > { %v1601_v17 = vpop.xlane.xlu1 %1600  ;;  %v4662_v6 = vsel %vm1521_vm1, %v3602_v10, 0.0  ;;  %3335 = vmatpush3.msra.mxu0 %v4742_v19 }
 0x3bd   : > { %3615 = vpow2.f32 %v1644_v11  ;;  %v1617_v14 = vsub.f32 %v4613_v7, %v1601_v17  ;;  %1676 = vadd.xlane.f32.xlu1 %v4658_v13  ;;  %1678 = vadd.xlane.f32.xlu0 %v4662_v6  ;;  %v1735_v7 = vld [vmem:[#allocation8 + $0x28] sm:$0xff] }
 0x3be   : > { %v3604_v20 = vpop.eup %3603  ;;  %3617 = vpow2.f32 %v1646_v12  ;;  %3290 = vmatprep.subr.mxu1 %v1735_v7  ;;  %3336 = vmatprep.subr.mxu0 %v4749_v47 }
 0x3bf   : > { %v3606_v21 = vpop.eup %3605  ;;  %v1648_v22 = vmul.f32 1.442695, %v1617_v14  ;;  %v4669_v24 = vsel %vm1521_vm1, %v3604_v20, 0.0  ;;  %3291 = vmatpush3.msra.mxu1 %v1735_v7  ;;  %3337 = vmatpush3.msra.mxu0 %v4749_v47 }
 0x3c0   : > { %v4673_v26 = vsel %vm1521_vm1, %v3606_v21, 0.0  ;;  %3292 = vmatprep.subr.mxu1 %v1734_v32  ;;  %3338 = vmatprep.subr.mxu0 %v4756_v50 }
 0x3c1   : > { %3619 = vpow2.f32 %v1648_v22  ;;  %1680 = vadd.xlane.f32.xlu1 %v4669_v24  ;;  %1682 = vadd.xlane.f32.xlu0 %v4673_v26 }
 0x3c2   : > { %v3608_v27 = vpop.eup %3607  ;;  %3293 = vmatpush3.msra.mxu1 %v1734_v32  ;;  %3339 = vmatpush3.msra.mxu0 %v4756_v50 }
 0x3c3   : > { %v3610_v28 = vpop.eup %3609  ;;  %v4679_v30 = vsel %vm1521_vm1, %v3608_v27, 0.0  ;;  %3294 = vmatprep.subr.mxu1 %v1733_v34  ;;  %3340 = vmatprep.subr.mxu0 %v4763_v29 }
 0x3c4   : > { %v4683_v31 = vsel %vm1521_vm1, %v3610_v28, 0.0  ;;  %3295 = vmatpush3.msra.mxu1 %v1733_v34  ;;  %3341 = vmatpush3.msra.mxu0 %v4763_v29 }
 0x3c5   : > { %1684 = vadd.xlane.f32.xlu1 %v4679_v30  ;;  %1686 = vadd.xlane.f32.xlu0 %v4683_v31 }
 0x3c6   : > { %v3612_v35 = vpop.eup %3611  ;;  %3296 = vmatprep.subr.mxu1 %v1732_v39  ;;  %3342 = vmatprep.subr.mxu0 %v4770_v33 }
 0x3c7   : > { %v3614_v38 = vpop.eup %3613  ;;  %v4689_v36 = vsel %vm1521_vm1, %v3612_v35, 0.0  ;;  %3297 = vmatpush3.msra.mxu1 %v1732_v39  ;;  %3343 = vmatpush3.msra.mxu0 %v4770_v33 }
 0x3c8   : > { %v4693_v37 = vsel %vm1521_vm1, %v3614_v38, 0.0  ;;  %3298 = vmatprep.subr.mxu1 %v1731_v41  ;;  %3344 = vmatprep.subr.mxu0 %v4777_v51 }
 0x3c9   : > { %1688 = vadd.xlane.f32.xlu1 %v4689_v36  ;;  %1690 = vadd.xlane.f32.xlu0 %v4693_v37 }
 0x3ca   : > { %v3616_v52 = vpop.eup %3615  ;;  %3299 = vmatpush3.msra.mxu1 %v1731_v41  ;;  %3345 = vmatpush3.msra.mxu0 %v4777_v51 }
 0x3cb   : > { %v3618_v53 = vpop.eup %3617  ;;  %v4699_v40 = vsel %vm1521_vm1, %v3616_v52, 0.0  ;;  %3300 = vmatprep.subr.mxu1 %v1730_v62  ;;  %3346 = vmatprep.subr.mxu0 %v4784_v54 }
 0x3cc   : > { %v4703_v42 = vsel %vm1521_vm1, %v3618_v53, 0.0  ;;  %3301 = vmatpush3.msra.mxu1 %v1730_v62  ;;  %3347 = vmatpush3.msra.mxu0 %v4784_v54 }
 0x3cd   : > { %1692 = vadd.xlane.f32.xlu1 %v4699_v40  ;;  %1694 = vadd.xlane.f32.xlu0 %v4703_v42 }
 0x3ce   : > { %v3620_v2 = vpop.eup %3619  ;;  %3446 = vmatprep.subr.mxu1 %v4715_v44  ;;  %3348 = vmatprep.subr.mxu0 %v4791_v56 }
 0x3cf   : > { %v4709_v43 = vsel %vm1521_vm1, %v3620_v2, 0.0  ;;  %3349 = vmatpush3.msra.mxu0 %v4791_v56 }
 0x3d0   : > { %3350 = vmatprep.subr.mxu0 %v4798_v58 }
 0x3d1   : > { %1696 = vadd.xlane.f32.xlu1 %v4709_v43  ;;  %3351 = vmatpush3.msra.mxu0 %v4798_v58 }
 0x3d2   : > { %3352 = vmatprep.subr.mxu0 %v4805_v48 }
 0x3d3   : > { %3353 = vmatpush3.msra.mxu0 %v4805_v48 }
 0x3d4   : > { %3354 = vmatprep.subr.mxu0 %v4812_v49 }
 0x3d5   : > { %3355 = vmatpush3.msra.mxu0 %v4812_v49 }
 0x439   : > { %v1667_v59 = vpop.xlane.xlu0 %1666 }
 0x43a   : > { %3621 = vrcp.f32 %v1667_v59 }
 0x43d   : > { %v1671_v61 = vpop.xlane.xlu0 %1670 }
 0x43e   : > { %v1669_v63 = vpop.xlane.xlu1 %1668  ;;  %3623 = vrcp.f32 %v1671_v61 }
 0x43f   : > { %3625 = vrcp.f32 %v1669_v63 }
 0x442   : > { %v1673_v0 = vpop.xlane.xlu1 %1672  ;;  %v1675_v4 = vpop.xlane.xlu0 %1674 }
 0x443   : > { %3627 = vrcp.f32 %v1673_v0  ;;  %v2076_v0 = vld [vmem:[#allocation10 + $0x8] sm:$0xff] }
 0x444   : > { %3629 = vrcp.f32 %v1675_v4  ;;  %v2075_v4 = vld [vmem:[#allocation10] sm:$0xff] }
 0x446   : > { %v1677_v15 = vpop.xlane.xlu1 %1676  ;;  %v1679_v60 = vpop.xlane.xlu0 %1678 }
 0x447   : > { %v3622_v1 = vpop.eup %3621  ;;  %3631 = vrcp.f32 %v1677_v15  ;;  %v2298_v15 = vld [vmem:[#allocation11 + $0x18] sm:$0xff] }
 0x448   : > { %3633 = vrcp.f32 %v1679_v60  ;;  %v1714_v8 = vmul.f32 %v3622_v1, %v4627_v46  ;;  %v2297_v60 = vld [vmem:[#allocation11 + $0x10] sm:$0xff]  ;;  %v2296_v1 = vld [vmem:[#allocation11 + $0x8] sm:$0xff] }
 0x44a   : > { %v1681_v9 = vpop.xlane.xlu1 %1680  ;;  %v1683_v10 = vpop.xlane.xlu0 %1682  ;;  %3302 = vmatprep.mubr.f32.mxu1 %v1714_v8  ;;  %v2872_v8 = vld [vmem:[%s5057_s12] ss:$0 sm:$0xff] }
 0x44b   : > { %v3624_v11 = vpop.eup %3623  ;;  %3635 = vrcp.f32 %v1681_v9 }
 0x44c   : > { %v3626_v12 = vpop.eup %3625  ;;  %3637 = vrcp.f32 %v1683_v10  ;;  %v1716_v16 = vmul.f32 %v3624_v11, %v4634_v55 }
 0x44d   : > { %v1715_v17 = vmul.f32 %v3626_v12, %v4639_v57 }
 0x44e   : > { %v1685_v14 = vpop.xlane.xlu1 %1684  ;;  %v1687_v20 = vpop.xlane.xlu0 %1686 }
 0x44f   : > { %3639 = vrcp.f32 %v1685_v14  ;;  %3303 = vmatmul.mubr.f32.vlgmr.msra.gmra.mxu1 %v1715_v17 }
 0x450   : > { %v3628_v21 = vpop.eup %3627  ;;  %3641 = vrcp.f32 %v1687_v20  ;;  %3305 = vmatprep.mubr.f32.mxu1 %v1716_v16  ;;  %3462 = vmatpush3.msra.mxu1 %v4715_v44 }
 0x451   : > { %v3630_v46 = vpop.eup %3629  ;;  %v1717_v22 = vmul.f32 %v3628_v21, %v4646_v3  ;;  %3447 = vmatprep.subr.mxu1 %v4720_v45 }
 0x452   : > { %v1689_v25 = vpop.xlane.xlu1 %1688  ;;  %v1691_v7 = vpop.xlane.xlu0 %1690  ;;  %v1718_v55 = vmul.f32 %v3630_v46, %v4650_v5  ;;  %3463 = vmatpush3.msra.mxu1 %v4720_v45 }
 0x453   : > { %3643 = vrcp.f32 %v1689_v25  ;;  %3306 = vmatmul.mubr.f32.gmra.mxu1 %v1717_v22  ;;  %3448 = vmatprep.subr.mxu1 %v4728_v23 }
 0x454   : > { %v3632_v57 = vpop.eup %3631  ;;  %3645 = vrcp.f32 %v1691_v7  ;;  %3308 = vmatprep.mubr.f32.mxu1 %v1718_v55  ;;  %3464 = vmatpush3.msra.mxu1 %v4728_v23 }
 0x455   : > { %v3634_v27 = vpop.eup %3633  ;;  %v1719_v3 = vmul.f32 %v3632_v57, %v4658_v13  ;;  %3449 = vmatprep.subr.mxu1 %v4735_v18 }
 0x456   : > { %v1693_v28 = vpop.xlane.xlu1 %1692  ;;  %v1695_v32 = vpop.xlane.xlu0 %1694  ;;  %v1720_v5 = vmul.f32 %v3634_v27, %v4662_v6  ;;  %3465 = vmatpush3.msra.mxu1 %v4735_v18 }
 0x457   : > { %3647 = vrcp.f32 %v1693_v28  ;;  %3309 = vmatmul.mubr.f32.gmra.mxu1 %v1719_v3  ;;  %3450 = vmatprep.subr.mxu1 %v4742_v19 }
 0x458   : > { %v3636_v34 = vpop.eup %3635  ;;  %3649 = vrcp.f32 %v1695_v32  ;;  %3311 = vmatprep.mubr.f32.mxu1 %v1720_v5  ;;  %3466 = vmatpush3.msra.mxu1 %v4742_v19 }
 0x459   : > { %v3638_v35 = vpop.eup %3637  ;;  %v1721_v13 = vmul.f32 %v3636_v34, %v4669_v24  ;;  %3451 = vmatprep.subr.mxu1 %v4749_v47 }
 0x45a   : > { %v1697_v38 = vpop.xlane.xlu1 %1696  ;;  %v1722_v39 = vmul.f32 %v3638_v35, %v4673_v26  ;;  %3467 = vmatpush3.msra.mxu1 %v4749_v47 }
 0x45b   : > { %3651 = vrcp.f32 %v1697_v38  ;;  %3312 = vmatmul.mubr.f32.gmra.mxu1 %v1721_v13  ;;  %3452 = vmatprep.subr.mxu1 %v4756_v50 }
 0x45c   : > { %v3640_v6 = vpop.eup %3639  ;;  %3314 = vmatprep.mubr.f32.mxu1 %v1722_v39  ;;  %3468 = vmatpush3.msra.mxu1 %v4756_v50 }
 0x45d   : > { %v3642_v52 = vpop.eup %3641  ;;  %v1723_v53 = vmul.f32 %v3640_v6, %v4679_v30  ;;  %3453 = vmatprep.subr.mxu1 %v4763_v29 }
 0x45e   : > { %v1724_v24 = vmul.f32 %v3642_v52, %v4683_v31  ;;  %3469 = vmatpush3.msra.mxu1 %v4763_v29 }
 0x45f   : > { %3315 = vmatmul.mubr.f32.gmra.mxu1 %v1723_v53  ;;  %3454 = vmatprep.subr.mxu1 %v4770_v33 }
 0x460   : > { %v3644_v26 = vpop.eup %3643  ;;  %3317 = vmatprep.mubr.f32.mxu1 %v1724_v24  ;;  %3470 = vmatpush3.msra.mxu1 %v4770_v33 }
 0x461   : > { %v3646_v41 = vpop.eup %3645  ;;  %v1725_v62 = vmul.f32 %v3644_v26, %v4689_v36  ;;  %3455 = vmatprep.subr.mxu1 %v4777_v51 }
 0x462   : > { %v1726_v30 = vmul.f32 %v3646_v41, %v4693_v37  ;;  %3471 = vmatpush3.msra.mxu1 %v4777_v51 }
 0x463   : > { %3318 = vmatmul.mubr.f32.gmra.mxu1 %v1725_v62  ;;  %3456 = vmatprep.subr.mxu1 %v4784_v54 }
 0x464   : > { %v3648_v31 = vpop.eup %3647  ;;  %3320 = vmatprep.mubr.f32.mxu1 %v1726_v30  ;;  %3472 = vmatpush3.msra.mxu1 %v4784_v54 }
 0x465   : > { %v3650_v2 = vpop.eup %3649  ;;  %v1727_v44 = vmul.f32 %v3648_v31, %v4699_v40  ;;  %3457 = vmatprep.subr.mxu1 %v4791_v56  ;;  %v1891_v40 = vld [vmem:[%s5056_s11] sm:$0xff] }
 0x466   : > { %v1728_v36 = vmul.f32 %v3650_v2, %v4703_v42  ;;  %3473 = vmatpush3.msra.mxu1 %v4791_v56  ;;  %3356 = vmatprep.subr.mxu0 %v1891_v40  ;;  %v2078_v42 = vld [vmem:[#allocation10 + $0x18] sm:$0xff] }
 0x467   : > { %3321 = vmatmul.mubr.f32.gmra.mxu1 %v1727_v44  ;;  %3458 = vmatprep.subr.mxu1 %v4798_v58 }
 0x468   : > { %v3652_v37 = vpop.eup %3651  ;;  %3323 = vmatprep.mubr.f32.mxu1 %v1728_v36  ;;  %3474 = vmatpush3.msra.mxu1 %v4798_v58 }
 0x469   : > { %v1729_v45 = vmul.f32 %v3652_v37, %v4709_v43  ;;  %3459 = vmatprep.subr.mxu1 %v4805_v48  ;;  %3357 = vmatpush3.msra.mxu0 %v1891_v40 }
 0x46a   : > { %3475 = vmatpush3.msra.mxu1 %v4805_v48  ;;  %v2077_v48 = vld [vmem:[#allocation10 + $0x10] sm:$0xff]  ;;  %3414 = vmatprep.subr.mxu0 %v2298_v15 }
 0x46b   : > { %3324 = vmatmul.mubr.f32.gmra.mxu1 %v1729_v45  ;;  %3460 = vmatprep.subr.mxu1 %v4812_v49 }
 0x46c   : > { %3476 = vmatpush3.msra.mxu1 %v4812_v49 }
 0x46d   : > { %3461 = vmatprep.subr.mxu1 %v1891_v40 }
 0x46e   : > { %3477 = vmatpush3.msra.mxu1 %v1891_v40 }
 0x46f   : > { %3382 = vmatprep.subr.mxu1 %v2078_v42 }
 0x50f   : > { %v3304_v43 = vpop.f32.mrf.mxu1 }
 0x511   : > { %v1812_v23 = vpop.f32.mrf.mxu1 }
 0x512   : > { %3358 = vmatprep.mubr.f32.mxu0 %v1812_v23 }
 0x513   : > { %v3307_v18 = vpop.f32.mrf.mxu1  ;;  %3359 = vmatmul.mubr.f32.vlgmr.msra.gmra.mxu0 %v3304_v43 }
 0x514   : > { %3415 = vmatpush3.msra.mxu0 %v2298_v15 }
 0x515   : > { %v1822_v19 = vpop.f32.mrf.mxu1  ;;  %3416 = vmatprep.subr.mxu0 %v2297_v60 }
 0x516   : > { %3361 = vmatprep.mubr.f32.mxu0 %v1822_v19  ;;  %3417 = vmatpush3.msra.mxu0 %v2297_v60 }
 0x517   : > { %v3310_v47 = vpop.f32.mrf.mxu1  ;;  %3362 = vmatmul.mubr.f32.gmra.mxu0 %v3307_v18  ;;  %3418 = vmatprep.subr.mxu0 %v2296_v1 }
 0x518   : > { %3419 = vmatpush3.msra.mxu0 %v2296_v1 }
 0x519   : > { %v1832_v50 = vpop.f32.mrf.mxu1 }
 0x51a   : > { %3364 = vmatprep.mubr.f32.mxu0 %v1832_v50 }
 0x51b   : > { %v3313_v29 = vpop.f32.mrf.mxu1  ;;  %3365 = vmatmul.mubr.f32.gmra.mxu0 %v3310_v47 }
 0x51d   : > { %v1842_v33 = vpop.f32.mrf.mxu1 }
 0x51e   : > { %3367 = vmatprep.mubr.f32.mxu0 %v1842_v33  ;;  %v2295_v33 = vld [vmem:[#allocation11] sm:$0xff] }
 0x51f   : > { %v3316_v51 = vpop.f32.mrf.mxu1  ;;  %3368 = vmatmul.mubr.f32.gmra.mxu0 %v3313_v29  ;;  %3420 = vmatprep.subr.mxu0 %v2295_v33 }
 0x520   : > { %3421 = vmatpush3.msra.mxu0 %v2295_v33 }
 0x521   : > { %v1852_v54 = vpop.f32.mrf.mxu1 }
 0x522   : > { %3370 = vmatprep.mubr.f32.mxu0 %v1852_v54 }
 0x523   : > { %v3319_v56 = vpop.f32.mrf.mxu1  ;;  %3371 = vmatmul.mubr.f32.gmra.mxu0 %v3316_v51  ;;  %v2873_v51 = vld [vmem:[%s5059_s14] ss:$0 sm:$0xff] }
 0x525   : > { %v1862_v58 = vpop.f32.mrf.mxu1 }
 0x526   : > { %3373 = vmatprep.mubr.f32.mxu1 %v1862_v58 }
 0x527   : > { %v3322_v49 = vpop.f32.mrf.mxu1  ;;  %3374 = vmatmul.mubr.f32.vlgmr.msra.gmra.mxu1 %v3319_v56 }
 0x528   : > { %3383 = vmatpush3.msra.mxu1 %v2078_v42 }
 0x529   : > { %v1872_v59 = vpop.f32.mrf.mxu1  ;;  %3384 = vmatprep.subr.mxu1 %v2077_v48 }
 0x52a   : > { %3376 = vmatprep.mubr.f32.mxu1 %v1872_v59  ;;  %3385 = vmatpush3.msra.mxu1 %v2077_v48 }
 0x52b   : > { %v3325_v61 = vpop.f32.mrf.mxu1  ;;  %3377 = vmatmul.mubr.f32.gmra.mxu1 %v3322_v49  ;;  %3386 = vmatprep.subr.mxu1 %v2076_v0 }
 0x52c   : > { %3387 = vmatpush3.msra.mxu1 %v2076_v0 }
 0x52d   : > { %v1882_v63 = vpop.f32.mrf.mxu1  ;;  %3388 = vmatprep.subr.mxu1 %v2075_v4 }
 0x52e   : > { %3379 = vmatprep.mubr.f32.mxu1 %v1882_v63  ;;  %3389 = vmatpush3.msra.mxu1 %v2075_v4 }
 0x52f   : > { %3380 = vmatmul.mubr.f32.gmra.mxu1 %v3325_v61 }
 0x5d3   : > { %v3360_v9 = vpop.f32.mrf.mxu0 }
 0x5d4   : > { %v1986_v10 = vadd.f32 %v3360_v9, %v2872_v8 }
 0x5d5   : > { %v1980_v11 = vpop.f32.mrf.mxu0 }
 0x5d6   : > { %v1981_v12 = vadd.f32 %v2872_v8, %v1980_v11  ;;  %v2060_v14 = vmax.f32 %v1986_v10, 0.0 }
 0x5d7   : > { %v3363_v16 = vpop.f32.mrf.mxu0 }
 0x5d8   : > { %v2059_v17 = vmax.f32 %v1981_v12, 0.0  ;;  %v1996_v20 = vadd.f32 %v3363_v16, %v2872_v8 }
 0x5d9   : > { %v1990_v21 = vpop.f32.mrf.mxu0 }
 0x5da   : > { %v1991_v46 = vadd.f32 %v2872_v8, %v1990_v21  ;;  %3390 = vmatprep.mubr.msk.f32.mxu1 %vm949_vm0, %v2059_v17  ;;  %v2062_v7 = vmax.f32 %v1996_v20, 0.0 }
 0x5db   : > { %v3366_v22 = vpop.f32.mrf.mxu0  ;;  %3391 = vmatmul.mubr.msk.f32.vlgmr.msra.gmra.mxu1 %vm949_vm0, %v2060_v14 }
 0x5dc   : > { %v2061_v25 = vmax.f32 %v1991_v46, 0.0  ;;  %v2006_v55 = vadd.f32 %v3366_v22, %v2872_v8 }
 0x5dd   : > { %v2000_v57 = vpop.f32.mrf.mxu0 }
 0x5de   : > { %v2001_v27 = vadd.f32 %v2872_v8, %v2000_v57  ;;  %3393 = vmatprep.mubr.msk.f32.mxu1 %vm949_vm0, %v2061_v25  ;;  %v2064_v32 = vmax.f32 %v2006_v55, 0.0 }
 0x5df   : > { %v3369_v3 = vpop.f32.mrf.mxu0  ;;  %3394 = vmatmul.mubr.msk.f32.gmra.mxu1 %vm949_vm0, %v2062_v7 }
 0x5e0   : > { %v2063_v28 = vmax.f32 %v2001_v27, 0.0  ;;  %v2016_v5 = vadd.f32 %v3369_v3, %v2872_v8 }
 0x5e1   : > { %v2010_v34 = vpop.f32.mrf.mxu0 }
 0x5e2   : > { %v2011_v35 = vadd.f32 %v2872_v8, %v2010_v34  ;;  %3396 = vmatprep.mubr.msk.f32.mxu1 %vm949_vm0, %v2063_v28  ;;  %v2066_v39 = vmax.f32 %v2016_v5, 0.0 }
 0x5e3   : > { %v3372_v13 = vpop.f32.mrf.mxu0  ;;  %3397 = vmatmul.mubr.msk.f32.gmra.mxu1 %vm949_vm0, %v2064_v32 }
 0x5e4   : > { %v2065_v38 = vmax.f32 %v2011_v35, 0.0  ;;  %v2026_v6 = vadd.f32 %v3372_v13, %v2872_v8 }
 0x5e5   : > { %v2020_v52 = vpop.f32.mrf.mxu0 }
 0x5e6   : > { %v2021_v53 = vadd.f32 %v2872_v8, %v2020_v52  ;;  %3399 = vmatprep.mubr.msk.f32.mxu1 %vm949_vm0, %v2065_v38  ;;  %v2068_v41 = vmax.f32 %v2026_v6, 0.0 }
 0x5e7   : > { %v3375_v24 = vpop.f32.mrf.mxu1  ;;  %3400 = vmatmul.mubr.msk.f32.gmra.mxu1 %vm949_vm0, %v2066_v39 }
 0x5e8   : > { %v2067_v26 = vmax.f32 %v2021_v53, 0.0  ;;  %v2036_v62 = vadd.f32 %v3375_v24, %v2872_v8 }
 0x5e9   : > { %v2030_v30 = vpop.f32.mrf.mxu1 }
 0x5ea   : > { %v2031_v31 = vadd.f32 %v2872_v8, %v2030_v30  ;;  %3402 = vmatprep.mubr.msk.f32.mxu1 %vm949_vm0, %v2067_v26  ;;  %v2070_v36 = vmax.f32 %v2036_v62, 0.0 }
 0x5eb   : > { %v3378_v2 = vpop.f32.mrf.mxu1  ;;  %3403 = vmatmul.mubr.msk.f32.gmra.mxu1 %vm949_vm0, %v2068_v41 }
 0x5ec   : > { %v2069_v44 = vmax.f32 %v2031_v31, 0.0  ;;  %v2046_v37 = vadd.f32 %v3378_v2, %v2872_v8 }
 0x5ed   : > { %v2040_v45 = vpop.f32.mrf.mxu1 }
 0x5ee   : > { %v2041_v40 = vadd.f32 %v2872_v8, %v2040_v45  ;;  %3405 = vmatprep.mubr.msk.f32.mxu1 %vm949_vm0, %v2069_v44  ;;  %v2072_v23 = vmax.f32 %v2046_v37, 0.0 }
 0x5ef   : > { %v3381_v42 = vpop.f32.mrf.mxu1  ;;  %3406 = vmatmul.mubr.msk.f32.gmra.mxu1 %vm949_vm0, %v2070_v36 }
 0x5f0   : > { %v2071_v43 = vmax.f32 %v2041_v40, 0.0  ;;  %v2056_v18 = vadd.f32 %v3381_v42, %v2872_v8 }
 0x5f1   : > { %v2050_v19 = vpop.f32.mrf.mxu1 }
 0x5f2   : > { %v2051_v47 = vadd.f32 %v2872_v8, %v2050_v19  ;;  %3408 = vmatprep.mubr.msk.f32.mxu1 %vm949_vm0, %v2071_v43  ;;  %v2074_v29 = vmax.f32 %v2056_v18, 0.0 }
 0x5f3   : > { %3409 = vmatmul.mubr.msk.f32.gmra.mxu1 %vm949_vm0, %v2072_v23 }
 0x5f4   : > { %v2073_v50 = vmax.f32 %v2051_v47, 0.0 }
 0x5f6   : > { %3411 = vmatprep.mubr.msk.f32.mxu1 %vm949_vm0, %v2073_v50 }
 0x5f7   : > { %3412 = vmatmul.mubr.msk.f32.gmra.mxu1 %vm949_vm0, %v2074_v29 }
 0x69b   : > { %v3392_v54 = vpop.f32.mrf.mxu1 }
 0x69c   : > { %v2206_v56 = vadd.f32 %v3392_v54, %v2873_v51 }
 0x69d   : > { %v2200_v58 = vpop.f32.mrf.mxu1 }
 0x69e   : > { %v2201_v48 = vadd.f32 %v2873_v51, %v2200_v58  ;;  %v2280_v61 = vmax.f32 %v2206_v56, 0.0 }
 0x69f   : > { %v3395_v49 = vpop.f32.mrf.mxu1 }
 0x6a0   : > { %v2279_v59 = vmax.f32 %v2201_v48, 0.0  ;;  %v2216_v63 = vadd.f32 %v3395_v49, %v2873_v51 }
 0x6a1   : > { %v2210_v0 = vpop.f32.mrf.mxu1 }
 0x6a2   : > { %v2211_v4 = vadd.f32 %v2873_v51, %v2210_v0  ;;  %3422 = vmatprep.mubr.msk.f32.mxu0 %vm949_vm0, %v2279_v59  ;;  %v2282_v1 = vmax.f32 %v2216_v63, 0.0 }
 0x6a3   : > { %v3398_v15 = vpop.f32.mrf.mxu1  ;;  %3423 = vmatmul.mubr.msk.f32.vlgmr.msra.gmra.mxu0 %vm949_vm0, %v2280_v61 }
 0x6a4   : > { %v2281_v60 = vmax.f32 %v2211_v4, 0.0  ;;  %v2226_v8 = vadd.f32 %v3398_v15, %v2873_v51 }
 0x6a5   : > { %v2220_v9 = vpop.f32.mrf.mxu1 }
 0x6a6   : > { %v2221_v10 = vadd.f32 %v2873_v51, %v2220_v9  ;;  %3425 = vmatprep.mubr.msk.f32.mxu0 %vm949_vm0, %v2281_v60  ;;  %v2284_v16 = vmax.f32 %v2226_v8, 0.0 }
 0x6a7   : > { %v3401_v11 = vpop.f32.mrf.mxu1  ;;  %3426 = vmatmul.mubr.msk.f32.gmra.mxu0 %vm949_vm0, %v2282_v1 }
 0x6a8   : > { %v2283_v12 = vmax.f32 %v2221_v10, 0.0  ;;  %v2236_v17 = vadd.f32 %v3401_v11, %v2873_v51 }
 0x6a9   : > { %v2230_v14 = vpop.f32.mrf.mxu1 }
 0x6aa   : > { %v2231_v20 = vadd.f32 %v2873_v51, %v2230_v14  ;;  %3428 = vmatprep.mubr.msk.f32.mxu0 %vm949_vm0, %v2283_v12  ;;  %v2286_v22 = vmax.f32 %v2236_v17, 0.0 }
 0x6ab   : > { %v3404_v21 = vpop.f32.mrf.mxu1  ;;  %3429 = vmatmul.mubr.msk.f32.gmra.mxu0 %vm949_vm0, %v2284_v16 }
 0x6ac   : > { %v2285_v46 = vmax.f32 %v2231_v20, 0.0  ;;  %v2246_v25 = vadd.f32 %v3404_v21, %v2873_v51 }
 0x6ad   : > { %v2240_v7 = vpop.f32.mrf.mxu1 }
 0x6ae   : > { %v2241_v55 = vadd.f32 %v2873_v51, %v2240_v7  ;;  %3431 = vmatprep.mubr.msk.f32.mxu0 %vm949_vm0, %v2285_v46  ;;  %v2288_v3 = vmax.f32 %v2246_v25, 0.0 }
 0x6af   : > { %v3407_v57 = vpop.f32.mrf.mxu1  ;;  %3432 = vmatmul.mubr.msk.f32.gmra.mxu0 %vm949_vm0, %v2286_v22 }
 0x6b0   : > { %v2287_v27 = vmax.f32 %v2241_v55, 0.0  ;;  %v2256_v28 = vadd.f32 %v3407_v57, %v2873_v51 }
 0x6b1   : > { %v2250_v32 = vpop.f32.mrf.mxu1 }
 0x6b2   : > { %v2251_v5 = vadd.f32 %v2873_v51, %v2250_v32  ;;  %3434 = vmatprep.mubr.msk.f32.mxu0 %vm949_vm0, %v2287_v27  ;;  %v2290_v13 = vmax.f32 %v2256_v28, 0.0 }
 0x6b3   : > { %v3410_v34 = vpop.f32.mrf.mxu1  ;;  %3435 = vmatmul.mubr.msk.f32.gmra.mxu0 %vm949_vm0, %v2288_v3 }
 0x6b4   : > { %v2289_v35 = vmax.f32 %v2251_v5, 0.0  ;;  %v2266_v38 = vadd.f32 %v3410_v34, %v2873_v51 }
 0x6b5   : > { %v2260_v39 = vpop.f32.mrf.mxu1 }
 0x6b6   : > { %v2261_v6 = vadd.f32 %v2873_v51, %v2260_v39  ;;  %3437 = vmatprep.mubr.msk.f32.mxu0 %vm949_vm0, %v2289_v35  ;;  %v2292_v24 = vmax.f32 %v2266_v38, 0.0 }
 0x6b7   : > { %v3413_v52 = vpop.f32.mrf.mxu1  ;;  %3438 = vmatmul.mubr.msk.f32.gmra.mxu0 %vm949_vm0, %v2290_v13 }
 0x6b8   : > { %v2291_v53 = vmax.f32 %v2261_v6, 0.0  ;;  %v2276_v26 = vadd.f32 %v3413_v52, %v2873_v51 }
 0x6b9   : > { %v2270_v41 = vpop.f32.mrf.mxu1 }
 0x6ba   : > { %v2271_v62 = vadd.f32 %v2873_v51, %v2270_v41  ;;  %3440 = vmatprep.mubr.msk.f32.mxu0 %vm949_vm0, %v2291_v53  ;;  %v2294_v31 = vmax.f32 %v2276_v26, 0.0 }
 0x6bb   : > { %3441 = vmatmul.mubr.msk.f32.gmra.mxu0 %vm949_vm0, %v2292_v24 }
 0x6bc   : > { %v2293_v30 = vmax.f32 %v2271_v62, 0.0 }
 0x6be   : > { %3443 = vmatprep.mubr.msk.f32.mxu0 %vm949_vm0, %v2293_v30 }
 0x6bf   : > { %3444 = vmatmul.mubr.msk.f32.gmra.mxu0 %vm949_vm0, %v2294_v31 }
 0x6c0   : > { %3824 = shalt.err (!%p3821_p4)
}
 0x6c1   : > { %s3825_s29 = scalar_lea.hbm %s4912_s13, 2048  ;;  %s3829_s10 = scalar_lea.hbm %s5063_s18, 4096 }
 0x6c2   : > { %p3826_p12 = scmp.ne.s32.totalorder %s4912_s13, %s3825_s29  ;;  %p3830_p7 = scmp.lt.s32.totalorder %s4912_s13, %s5063_s18 }
 0x6c3   : > { %p3831_p8 = scmp.lt.s32.totalorder %s3829_s10, %s3825_s29 }
 0x6c4   : > { %p3827_p6 = pnand %p3826_p12, %p5121_p0 }
 0x6c5   : > { %p3832_p10 = por %p3831_p8, %p3830_p7 }
 0x6c6   : > { %p3828_p2 = pneg %p3827_p6 }
 0x6c8   : > { %p3833_p11 = pnand %p3832_p10, %p3828_p2 }
 0x6ca   : > { %3836 = shalt.err (!%p3833_p11)
}
 0x6cb   : > { %s3954_s27 = smov 128   ;;  %s3955_s17 = smov 8  }
 0x6cc   : > { %3501 = dma.vmem_to_hbm [thread:$0]  (%p5121_p0), %s4915_s26, 2048, %s4912_s13, %s4917_s1, %s3954_s27, %s3954_s27, %s3955_s17  }
 0x6cd   : > { %s4947_s29 = scalar_lea.hbm %s5064_s19, %s4906_s23  ;;  %s2603_s15 = sshll.u32 %s4457_s24, 4  ;;  %s2604_s15 = int_to_ptr.vmem [resolvable:$true] %s2603_s15 }
 0x6ce   : > { %s3837_s10 = scalar_lea.vmem %s2604_s15, 2048  ;;  %s3956_s22 = smov [#allocation16]  }
 0x6cf   : > { %p3838_p13 = scmp.ne.s32.totalorder %s2604_s15, %s3837_s10  ;;  %s3841_s2 = sshll.u32 %s3956_s22, 4  ;;  %s3842_s2 = int_to_ptr.vmem [resolvable:$false] %s3841_s2 }
 0x6d0   : > { %s3843_s4 = scalar_lea.vmem %s3842_s2, 4096  ;;  %p3844_p1 = scmp.lt.s32.totalorder %s2604_s15, %s3842_s2 }
 0x6d1   : > { %p3839_p5 = pnand %p3838_p13, %p5121_p0  ;;  %p3845_p3 = scmp.lt.s32.totalorder %s3843_s4, %s3837_s10 }
 0x6d3   : > { %p3840_p9 = pneg %p3839_p5  ;;  %p3846_p4 = por %p3845_p3, %p3844_p1 }
 0x6d5   : > { %p3847_p12 = pnand %p3846_p4, %p3840_p9 }
 0x6d7   : > { %3850 = shalt.err (!%p3847_p12)
}
 0x6d8   : > { %s3851_s24 = scalar_lea.hbm %s4947_s29, 2048  ;;  %s3855_s3 = scalar_lea.hbm %s5064_s19, 4096 }
 0x6d9   : > { %p3852_p6 = scmp.ne.s32.totalorder %s4947_s29, %s3851_s24  ;;  %p3856_p8 = scmp.lt.s32.totalorder %s4947_s29, %s5064_s19 }
 0x6da   : > { %p3857_p10 = scmp.lt.s32.totalorder %s3855_s3, %s3851_s24 }
 0x6db   : > { %p3853_p2 = pnand %p3852_p6, %p5121_p0 }
 0x6dc   : > { %p3858_p11 = por %p3857_p10, %p3856_p8 }
 0x6dd   : > { %p3854_p7 = pneg %p3853_p2 }
 0x6df   : > { %p3859_p13 = pnand %p3858_p11, %p3854_p7 }
 0x6e1   : > { %3862 = shalt.err (!%p3859_p13)
}
 0x6e2   : > { %3502 = dma.vmem_to_hbm [thread:$0]  (%p5121_p0), %s2604_s15, 2048, %s4947_s29, %s4917_s1, %s3954_s27, %s3954_s27, %s3955_s17  }
 0x6e3   : > { %s5122_s2 = sld [smem:[#allocation36_spill]]  ;;  %s4974_s24 = scalar_lea.vmem [#allocation13], %s4243_s28 }
 0x6e4   : > { %s2571_s28 = sshll.u32 %s4974_s24, 4  ;;  %s5123_s15 = sld [smem:[#allocation37_spill]]  ;;  %s4998_s28 = int_to_ptr.vmem [resolvable:$true] %s2571_s28 }
 0x6e5   : > { %s2548_s26 = scalar_lea.sflag [#allocation4], %s4240_s20  ;;  %s3863_s3 = scalar_lea.vmem %s4998_s28, 2048 }
 0x6e6   : > { %p3864_p5 = scmp.ne.s32.totalorder %s4998_s28, %s3863_s3  ;;  %s3957_s8 = smov [#allocation13]  }
 0x6e7   : > { %s3867_s22 = sshll.u32 %s3957_s8, 4  ;;  %s3868_s22 = int_to_ptr.vmem [resolvable:$false] %s3867_s22 }
 0x6e8   : > { %p3865_p9 = pnand %p3864_p5, %p5121_p0  ;;  %s3869_s4 = scalar_lea.vmem %s3868_s22, 4096 }
 0x6e9   : > { %v2890_v2 = vld [vmem:[%s5122_s2] ss:$0 sm:$0xff]  ;;  %p3870_p3 = scmp.lt.s32.totalorder %s4998_s28, %s3868_s22  ;;  %p3871_p4 = scmp.lt.s32.totalorder %s3869_s4, %s3863_s3 }
 0x6ea   : > { %s4996_s13 = scalar_lea.hbm %s5123_s15, %s4906_s23  ;;  %p3866_p1 = pneg %p3865_p9 }
 0x6eb   : > { %p3872_p12 = por %p3871_p4, %p3870_p3 }
 0x6ed   : > { %p3873_p6 = pnand %p3872_p12, %p3866_p1 }
 0x763   : > { %v3424_v44 = vpop.f32.mrf.mxu0 }
 0x764   : > { %v2426_v36 = vadd.f32 %v3424_v44, %v2890_v2 }
 0x765   : > { %v2420_v37 = vpop.f32.mrf.mxu0 }
 0x766   : > { %2500 = vst [vmem:[%s4974_s24 + $0x8] sm:$0xff] %v2426_v36  ;;  %v2421_v45 = vadd.f32 %v2890_v2, %v2420_v37 }
 0x767   : > { %v3427_v40 = vpop.f32.mrf.mxu0 }
 0x768   : > { %2499 = vst [vmem:[%s4974_s24] sm:$0xff] %v2421_v45  ;;  %v2436_v42 = vadd.f32 %v3427_v40, %v2890_v2 }
 0x769   : > { %v2430_v43 = vpop.f32.mrf.mxu0 }
 0x76a   : > { %2502 = vst [vmem:[%s4974_s24 + $0x18] sm:$0xff] %v2436_v42  ;;  %v2431_v23 = vadd.f32 %v2890_v2, %v2430_v43 }
 0x76b   : > { %v3430_v18 = vpop.f32.mrf.mxu0 }
 0x76c   : > { %2501 = vst [vmem:[%s4974_s24 + $0x10] sm:$0xff] %v2431_v23  ;;  %v2446_v19 = vadd.f32 %v3430_v18, %v2890_v2 }
 0x76d   : > { %v2440_v47 = vpop.f32.mrf.mxu0 }
 0x76e   : > { %2504 = vst [vmem:[%s4974_s24 + $0x28] sm:$0xff] %v2446_v19  ;;  %v2441_v50 = vadd.f32 %v2890_v2, %v2440_v47 }
 0x76f   : > { %v3433_v29 = vpop.f32.mrf.mxu0 }
 0x770   : > { %2503 = vst [vmem:[%s4974_s24 + $0x20] sm:$0xff] %v2441_v50  ;;  %v2456_v33 = vadd.f32 %v3433_v29, %v2890_v2 }
 0x771   : > { %v2450_v51 = vpop.f32.mrf.mxu0 }
 0x772   : > { %2506 = vst [vmem:[%s4974_s24 + $0x38] sm:$0xff] %v2456_v33  ;;  %v2451_v54 = vadd.f32 %v2890_v2, %v2450_v51 }
 0x773   : > { %v3436_v56 = vpop.f32.mrf.mxu0 }
 0x774   : > { %2505 = vst [vmem:[%s4974_s24 + $0x30] sm:$0xff] %v2451_v54  ;;  %v2466_v58 = vadd.f32 %v3436_v56, %v2890_v2 }
 0x775   : > { %v2460_v48 = vpop.f32.mrf.mxu0 }
 0x776   : > { %2508 = vst [vmem:[%s4974_s24 + $0x48] sm:$0xff] %v2466_v58  ;;  %v2461_v49 = vadd.f32 %v2890_v2, %v2460_v48 }
 0x777   : > { %v3439_v59 = vpop.f32.mrf.mxu0 }
 0x778   : > { %2507 = vst [vmem:[%s4974_s24 + $0x40] sm:$0xff] %v2461_v49  ;;  %v2476_v61 = vadd.f32 %v3439_v59, %v2890_v2 }
 0x779   : > { %v2470_v63 = vpop.f32.mrf.mxu0 }
 0x77a   : > { %2510 = vst [vmem:[%s4974_s24 + $0x58] sm:$0xff] %v2476_v61  ;;  %v2471_v0 = vadd.f32 %v2890_v2, %v2470_v63 }
 0x77b   : > { %v3442_v4 = vpop.f32.mrf.mxu0 }
 0x77c   : > { %2509 = vst [vmem:[%s4974_s24 + $0x50] sm:$0xff] %v2471_v0  ;;  %v2486_v15 = vadd.f32 %v3442_v4, %v2890_v2 }
 0x77d   : > { %v2480_v60 = vpop.f32.mrf.mxu0 }
 0x77e   : > { %2512 = vst [vmem:[%s4974_s24 + $0x68] sm:$0xff] %v2486_v15  ;;  %v2481_v1 = vadd.f32 %v2890_v2, %v2480_v60 }
 0x77f   : > { %v3445_v8 = vpop.f32.mrf.mxu0 }
 0x780   : > { %2511 = vst [vmem:[%s4974_s24 + $0x60] sm:$0xff] %v2481_v1  ;;  %v2496_v9 = vadd.f32 %v3445_v8, %v2890_v2 }
 0x781   : > { %v2490_v10 = vpop.f32.mrf.mxu0 }
 0x782   : > { %2514 = vst [vmem:[%s4974_s24 + $0x78] sm:$0xff] %v2496_v9  ;;  %v2491_v11 = vadd.f32 %v2890_v2, %v2490_v10 }
 0x784   : > { %2513 = vst [vmem:[%s4974_s24 + $0x70] sm:$0xff] %v2491_v11 }
 0x785   : > { %3876 = shalt.err (!%p3873_p6)
}
 0x786   : > { %s3877_s23 = scalar_lea.hbm %s4996_s13, 2048  ;;  %s3881_s2 = scalar_lea.hbm %s5123_s15, 4096 }
 0x787   : > { %p3878_p2 = scmp.ne.s32.totalorder %s4996_s13, %s3877_s23  ;;  %p3882_p10 = scmp.lt.s32.totalorder %s4996_s13, %s5123_s15 }
 0x788   : > { %p3883_p11 = scmp.lt.s32.totalorder %s3881_s2, %s3877_s23 }
 0x789   : > { %p3879_p7 = pnand %p3878_p2, %p5121_p0 }
 0x78a   : > { %p3884_p13 = por %p3883_p11, %p3882_p10 }
 0x78b   : > { %p3880_p8 = pneg %p3879_p7 }
 0x78d   : > { %p3885_p5 = pnand %p3884_p13, %p3880_p8 }
 0x78f   : > { %3888 = shalt.err (!%p3885_p5)
}
 0x790   : > { %3500 = dma.vmem_to_hbm [thread:$0]  (%p5121_p0), %s4998_s28, 2048, %s4996_s13, %s2548_s26, %s3954_s27, %s3954_s27, %s3955_s17  }
 0x791 PF: > { %s2618_s29 = sand.u32 1, %s3931_s0   ;;  %p5124_p9 = scmp.ne.s32.totalorder %s5104_s25, 0 }
 0x792   : > { %p5125_p1 = scmp.ge.s32.totalorder %s3943_s21, 2  ;;  %s2619_s3 = scalar_lea.sflag [#allocation4], %s2618_s29 }
 0x794   : > { %p3527_p3 = pnand %p5125_p1, %p5124_p9 }
 0x796   : > { %p3528_p4 = pneg %p3527_p3 }
 0x798   : > { %3922 = dma.done.wait (%p3528_p4), %s2619_s3, 2048  }
 0x799   : > { %3924 = vsyncadd (%p3528_p4), %s2619_s3, 4294965248  ;;  %s5126_s6 = sadd.s32 4294967294, %s3943_s21  }
 0x79a   : > { %s2627_s8 = sand.u32 1, %s5126_s6  }
 0x79b   : > { %s2628_s22 = scalar_lea.sflag [#allocation15], %s2627_s8 }
 0x79c   : > { %3926 = dma.done.wait (%p3528_p4), %s2628_s22, 4096  }
 0x79d   : > { %3928 = vsyncadd (%p3528_p4), %s2628_s22, 4294963200  ;;  %s5127_s21 = sld [smem:[#allocation24_spill]]  ;;  %s5130_s0 = smov %s3935_s30 }
 0x79e   : > { %s5128_s27 = sld [smem:[#allocation23_spill]] }
 0x79f   : > { %s5129_s20 = sld [smem:[#allocation25_spill]] }
 0x7a3   : > { %p39_p0 = scmp.ge.s32.totalorder %s5127_s21, 4  }
 0x7a4   : > { %s5131_s30 = smov %s5128_s27 }
 0x7a5   :  { %41 = sbr.rel (!%p39_p0) target bundleno = 23 (0x17), region = 188 }
 0x7aa   :  { %2642 = vsyncpa [#allocation3], 1 }
 0x7ab   :  { %2644 = vsyncpa [#allocation3 + $0x1], 1 }
 0x7ac   :  { %2645 = vsyncpa [#allocation6], 1 }
 0x7ad   :  { %2646 = vsyncpa [#allocation9], 1 }
 0x7ae   :  { %2647 = vsyncpa [#allocation12], 1 }
 0x7af   :  { %2648 = vsyncpa [#allocation4], 1 }
 0x7b0   :  { %2650 = vsyncpa [#allocation4 + $0x1], 1 }
 0x7b1   :  { %2651 = vsyncpa [#allocation15], 1 }
 0x7b2   :  { %2653 = vsyncpa [#allocation15 + $0x1], 1 }

</bundles_post_ra>
